<compile_context>
chip_gen: v5e
topology: v5e:2x2
jax: 0.10.0
libtpu: 0.0.40
codegen_flags: <defaults>
</compile_context>

<pallas_src>
import functools

import jax
import jax.numpy as jnp
import numpy as np
from jax import lax
from jax.experimental import pallas as pl
from jax.experimental.pallas import tpu as pltpu

BN_EPS = 1e-5
LN_EPS = 1e-5
GIN_EPS = 0.0


def _round_up(v, m):
    return (v + m - 1) // m * m


# ----------------------------------------------------------------------------
# Fused Pallas kernel: all GIN layers in one invocation, everything in VMEM.
# ----------------------------------------------------------------------------
def gin_fused_kernel(adj_ref, x_ref,
                     w1_ref, b1_ref, bn_g_ref, bn_b_ref,
                     w2_ref, b2_ref, ln_g_ref, ln_b_ref,
                     a1_ref, a2_ref,
                     out_ref,
                     *, num_layers, n_real, c_real):
    n_pad = adj_ref.shape[0]

    # adj_hat (self-loop folded in) is loaded ONCE and reused by all layers.
    adj = adj_ref[...]                                        # bf16 (exact ints)

    inv_n = 1.0 / float(n_real)
    inv_c = 1.0 / float(c_real)

    # Only build a row mask if the node dim is actually padded (static check).
    if n_pad > n_real:
        row_mask = (lax.broadcasted_iota(jnp.int32, (n_pad, 1), 0)
                    < n_real).astype(jnp.float32)
    else:
        row_mask = None

    h = x_ref[...]                                            # bf16 activations
    t = None
    for l in range(num_layers):
        # ---- GINConv aggregation: adj_hat @ h  (bf16 x bf16 -> f32 acc, MXU)
        agg = jnp.dot(adj, h, preferred_element_type=jnp.float32)

        # ---- Linear 1 (bf16 operands, f32 accumulation)
        t = (jnp.dot(agg.astype(jnp.bfloat16), w1_ref[l],
                     preferred_element_type=jnp.float32) + b1_ref[l])

        # Zero padded node rows once so they drop out of the BN statistics.
        if row_mask is not None:
            t = t * row_mask

        # ---- BatchNorm1d (single-pass stats over the real node rows)
        s1 = jnp.sum(t, axis=0, keepdims=True) * inv_n
        s2 = jnp.sum(t * t, axis=0, keepdims=True) * inv_n
        var = jnp.maximum(s2 - s1 * s1, 0.0)
        t = (t - s1) * lax.rsqrt(var + BN_EPS) * bn_g_ref[l] + bn_b_ref[l]

        # ---- PReLU (scalar alpha from SMEM)
        a1 = a1_ref[l]
        t = jnp.where(t >= 0.0, t, a1 * t)

        # ---- Linear 2 (bf16 operands, f32 accumulation)
        t = (jnp.dot(t.astype(jnp.bfloat16), w2_ref[l],
                     preferred_element_type=jnp.float32) + b2_ref[l])

        # ---- LayerNorm (single-pass stats; padded feature lanes are exactly 0
        #      because w2/b2 padding is zero, so unmasked sums are exact)
        m1 = jnp.sum(t, axis=-1, keepdims=True) * inv_c
        m2 = jnp.sum(t * t, axis=-1, keepdims=True) * inv_c
        v = jnp.maximum(m2 - m1 * m1, 0.0)
        t = (t - m1) * lax.rsqrt(v + LN_EPS) * ln_g_ref[l] + ln_b_ref[l]

        # ---- Outer PReLU
        a2 = a2_ref[l]
        t = jnp.where(t >= 0.0, t, a2 * t)

        # Next layer's aggregation input (bf16 for the MXU).
        h = t.astype(jnp.bfloat16)

    out_ref[...] = t.astype(out_ref.dtype)


# ----------------------------------------------------------------------------
# Host-side glue: adjacency construction, parameter padding / stacking
# ----------------------------------------------------------------------------
def edge_index_to_adj_hat(edge_index, num_nodes, n_pad):
    # Dense adjacency built directly at padded size:
    # adj[dst, src] = edge multiplicity (source_to_target flow), plus the GIN
    # self-connection (1 + eps) * I on the real diagonal.  Small integers ->
    # exact in bf16.
    src, dst = edge_index[0], edge_index[1]
    adj = jnp.zeros((n_pad, n_pad), jnp.float32)
    adj = adj.at[dst, src].add(1.0)
    diag = (jnp.arange(n_pad) < num_nodes).astype(jnp.float32) * (1.0 + GIN_EPS)
    adj = adj + jnp.diag(diag)
    return adj.astype(jnp.bfloat16)


def _pad_mat(a, c_pad):
    return jnp.pad(a, ((0, c_pad - a.shape[0]), (0, c_pad - a.shape[1])))


def _pad_row(a, c_pad):
    return jnp.pad(a, ((0, 0), (0, c_pad - a.shape[1])))


def pad_and_stack_params(layers, c_pad):
    return dict(
        # Linear weights in bf16 -> native MXU operands, half the VMEM/DMA.
        w1=jnp.stack([_pad_mat(p["w1"], c_pad) for p in layers]).astype(jnp.bfloat16),
        b1=jnp.stack([_pad_row(p["b1"], c_pad) for p in layers]),
        bn_g=jnp.stack([_pad_row(p["bn_g"], c_pad) for p in layers]),
        bn_b=jnp.stack([_pad_row(p["bn_b"], c_pad) for p in layers]),
        w2=jnp.stack([_pad_mat(p["w2"], c_pad) for p in layers]).astype(jnp.bfloat16),
        b2=jnp.stack([_pad_row(p["b2"], c_pad) for p in layers]),
        ln_g=jnp.stack([_pad_row(p["ln_g"], c_pad) for p in layers]),
        ln_b=jnp.stack([_pad_row(p["ln_b"], c_pad) for p in layers]),
        a1=jnp.stack([p["a1"] for p in layers]),
        a2=jnp.stack([p["a2"] for p in layers]),
    )


def make_gin_params(key, in_channels, hidden_channels, out_channels, num_layers):
    layers = []
    for i in range(num_layers):
        d_in = in_channels if i == 0 else hidden_channels
        d_out = out_channels if i == num_layers - 1 else hidden_channels
        key, k1, k2, k3, k4 = jax.random.split(key, 5)
        bound1 = 1.0 / np.sqrt(d_in)
        bound2 = 1.0 / np.sqrt(hidden_channels)
        layers.append(dict(
            # Linear weights stored as (in, out) so the kernel does x @ W + b.
            w1=jax.random.uniform(k1, (d_in, hidden_channels), jnp.float32,
                                  -bound1, bound1),
            b1=jax.random.uniform(k2, (1, hidden_channels), jnp.float32,
                                  -bound1, bound1),
            bn_g=jnp.ones((1, hidden_channels), jnp.float32),
            bn_b=jnp.zeros((1, hidden_channels), jnp.float32),
            a1=jnp.float32(0.25),                         # PReLU inside MLP
            w2=jax.random.uniform(k3, (hidden_channels, d_out), jnp.float32,
                                  -bound2, bound2),
            b2=jax.random.uniform(k4, (1, d_out), jnp.float32,
                                  -bound2, bound2),
            ln_g=jnp.ones((1, d_out), jnp.float32),
            ln_b=jnp.zeros((1, d_out), jnp.float32),
            a2=jnp.float32(0.25),                         # PReLU after LayerNorm
        ))
    return layers


def _nbytes(a):
    return int(np.prod(a.shape)) * jnp.dtype(a.dtype).itemsize


@jax.jit
def gin_forward(x, edge_index, layer_params):
    num_nodes, in_ch = x.shape
    hidden = layer_params[0]["w1"].shape[1]
    out_ch = layer_params[-1]["w2"].shape[1]
    num_layers = len(layer_params)
    # The original module applies LayerNorm(hidden_channels) after every conv,
    # including the last one (which outputs out_channels) -> they must match.
    assert out_ch == hidden, "GIN module requires out_channels == hidden_channels"
    assert num_layers >= 1

    n_pad = _round_up(max(num_nodes, 16), 16)            # bf16 sublane friendly
    c_pad = _round_up(max(in_ch, hidden, out_ch), 128)   # lane-dense channels

    adj_hat = edge_index_to_adj_hat(edge_index, num_nodes, n_pad)
    stacked = pad_and_stack_params(layer_params, c_pad)
    x_pad = (jnp.zeros((n_pad, c_pad), jnp.bfloat16)
             .at[:num_nodes, :in_ch].set(x.astype(jnp.bfloat16)))

    kernel = functools.partial(gin_fused_kernel,
                               num_layers=num_layers,
                               n_real=num_nodes,
                               c_real=hidden)    # LayerNorm dim == hidden == out

    vmem = pl.BlockSpec(memory_space=pltpu.MemorySpace.VMEM)
    smem = pl.BlockSpec(memory_space=pltpu.MemorySpace.SMEM)

    # Explicit VMEM budget: resident inputs + output + headroom for the
    # per-layer intermediates.  Capped well below v7x's 64 MiB physical VMEM.
    resident = (_nbytes(adj_hat) + _nbytes(x_pad)
                + sum(_nbytes(v) for v in stacked.values())
                + n_pad * c_pad * 4)
    vmem_limit = int(min(resident + (16 << 20), 64 << 20))

    out_pad = pl.pallas_call(
        kernel,
        out_shape=jax.ShapeDtypeStruct((n_pad, c_pad), jnp.float32),
        in_specs=[vmem] * 10 + [smem] * 2,
        out_specs=vmem,
        compiler_params=pltpu.CompilerParams(vmem_limit_bytes=vmem_limit),
    )(adj_hat, x_pad,
      stacked["w1"], stacked["b1"], stacked["bn_g"], stacked["bn_b"],
      stacked["w2"], stacked["b2"], stacked["ln_g"], stacked["ln_b"],
      stacked["a1"], stacked["a2"])

    return out_pad[:num_nodes, :out_ch]


# ----------------------------------------------------------------------------
# Pure-JAX reference (mirrors the kernel math exactly, incl. bf16 matmuls and
# single-pass norm statistics)
# ----------------------------------------------------------------------------
def gin_forward_ref(x, edge_index, layer_params, num_nodes):
    src, dst = edge_index[0], edge_index[1]
    adj = jnp.zeros((num_nodes, num_nodes), jnp.float32).at[dst, src].add(1.0)
    adj_hat = (adj + (1.0 + GIN_EPS) * jnp.eye(num_nodes)).astype(jnp.bfloat16)
    h = x.astype(jnp.bfloat16)
    t = None
    for p in layer_params:
        agg = jnp.dot(adj_hat, h, preferred_element_type=jnp.float32)
        t = (jnp.dot(agg.astype(jnp.bfloat16), p["w1"].astype(jnp.bfloat16),
                     preferred_element_type=jnp.float32) + p["b1"])
        s1 = jnp.mean(t, axis=0, keepdims=True)
        s2 = jnp.mean(t * t, axis=0, keepdims=True)
        var = jnp.maximum(s2 - s1 * s1, 0.0)
        t = (t - s1) * lax.rsqrt(var + BN_EPS) * p["bn_g"] + p["bn_b"]
        t = jnp.where(t >= 0.0, t, p["a1"] * t)
        t = (jnp.dot(t.astype(jnp.bfloat16), p["w2"].astype(jnp.bfloat16),
                     preferred_element_type=jnp.float32) + p["b2"])
        m1 = jnp.mean(t, axis=-1, keepdims=True)
        m2 = jnp.mean(t * t, axis=-1, keepdims=True)
        v = jnp.maximum(m2 - m1 * m1, 0.0)
        t = (t - m1) * lax.rsqrt(v + LN_EPS) * p["ln_g"] + p["ln_b"]
        t = jnp.where(t >= 0.0, t, p["a2"] * t)
        h = t.astype(jnp.bfloat16)
    return t


if __name__ == "__main__":
    # Small synthetic graph consistent with the module's forward signature.
    # TODO(synk): BatchNorm running-mean/var buffers (momentum=0.99) are not
    # updated; the forward uses training-mode batch statistics.
    NUM_NODES = 64
    NUM_EDGES = 128
    IN_CH, HID_CH, OUT_CH, NUM_LAYERS = 16, 32, 32, 3

    key = jax.random.PRNGKey(0)
    kx, ke, kp = jax.random.split(key, 3)

    x = jax.random.normal(kx, (NUM_NODES, IN_CH), jnp.float32)
    edge_index = jax.random.randint(ke, (2, NUM_EDGES), 0, NUM_NODES, jnp.int32)
    layer_params = make_gin_params(kp, IN_CH, HID_CH, OUT_CH, NUM_LAYERS)

    out = gin_forward(x, edge_index, layer_params)
    out = jax.block_until_ready(out)

    ref = gin_forward_ref(x, edge_index, layer_params, NUM_NODES)
    ref = jax.block_until_ready(ref)

    # Kernel and reference use identical bf16 MXU matmuls and identical norm
    # math; the tolerance covers reduction-order / bf16-rounding differences
    # between the Mosaic and XLA lowerings accumulated over 3 layers.
    np.testing.assert_allclose(np.asarray(out), np.asarray(ref),
                               rtol=1e-2, atol=1e-2)

    print("KERNEL_OK")
</pallas_src>

<mosaic_0001>
module attributes {stable_mosaic.version = 11 : i64} {
  func.func @gin_fused_kernel(%arg0: memref<64x64xbf16, #tpu.memory_space<vmem>>, %arg1: memref<64x128xbf16, #tpu.memory_space<vmem>>, %arg2: memref<3x128x128xbf16, #tpu.memory_space<vmem>>, %arg3: memref<3x1x128xf32, #tpu.memory_space<vmem>>, %arg4: memref<3x1x128xf32, #tpu.memory_space<vmem>>, %arg5: memref<3x1x128xf32, #tpu.memory_space<vmem>>, %arg6: memref<3x128x128xbf16, #tpu.memory_space<vmem>>, %arg7: memref<3x1x128xf32, #tpu.memory_space<vmem>>, %arg8: memref<3x1x128xf32, #tpu.memory_space<vmem>>, %arg9: memref<3x1x128xf32, #tpu.memory_space<vmem>>, %arg10: memref<3xf32, #tpu.memory_space<smem>>, %arg11: memref<3xf32, #tpu.memory_space<smem>>, %arg12: memref<64x128xf32, #tpu.memory_space<vmem>>) attributes {dimension_semantics = [], scalar_prefetch = 0 : i64, scratch_operands = 0 : i64, tpu.core_type = #tpu.core_type<tc>} {
    %c0 = arith.constant 0 : index
    %c0_0 = arith.constant 0 : index
    %0 = vector.load %arg0[%c0, %c0_0] : memref<64x64xbf16, #tpu.memory_space<vmem>>, vector<64x64xbf16>
    %c0_1 = arith.constant 0 : index
    %c0_2 = arith.constant 0 : index
    %1 = vector.load %arg1[%c0_1, %c0_2] : memref<64x128xbf16, #tpu.memory_space<vmem>>, vector<64x128xbf16>
    %cst = arith.constant dense<0.000000e+00> : vector<64x128xf32>
    %2 = tpu.matmul %0, %1, %cst {dimension_numbers = #tpu.dot_dimension_numbers<[1], [0], [0], [1], [0, 0, 1, 1], [], []>} : vector<64x64xbf16>, vector<64x128xbf16>, vector<64x128xf32> -> vector<64x128xf32>
    %3 = arith.truncf %2 : vector<64x128xf32> to vector<64x128xbf16>
    %c0_3 = arith.constant 0 : index
    %c0_4 = arith.constant 0 : index
    %c0_5 = arith.constant 0 : index
    %4 = vector.load %arg2[%c0_3, %c0_4, %c0_5] : memref<3x128x128xbf16, #tpu.memory_space<vmem>>, vector<1x128x128xbf16>
    %5 = vector.shape_cast %4 : vector<1x128x128xbf16> to vector<128x128xbf16>
    %cst_6 = arith.constant dense<0.000000e+00> : vector<64x128xf32>
    %6 = tpu.matmul %3, %5, %cst_6 {dimension_numbers = #tpu.dot_dimension_numbers<[1], [0], [0], [1], [0, 0, 1, 1], [], []>} : vector<64x128xbf16>, vector<128x128xbf16>, vector<64x128xf32> -> vector<64x128xf32>
    %c0_7 = arith.constant 0 : index
    %c0_8 = arith.constant 0 : index
    %c0_9 = arith.constant 0 : index
    %7 = vector.load %arg3[%c0_7, %c0_8, %c0_9] : memref<3x1x128xf32, #tpu.memory_space<vmem>>, vector<1x1x128xf32>
    %8 = vector.shape_cast %7 : vector<1x1x128xf32> to vector<1x128xf32>
    %9 = vector.broadcast %8 : vector<1x128xf32> to vector<64x128xf32>
    %10 = arith.addf %6, %9 : vector<64x128xf32>
    %cst_10 = arith.constant dense<0.000000e+00> : vector<128xf32>
    %11 = vector.multi_reduction <add>, %10, %cst_10 [0] : vector<64x128xf32> to vector<128xf32>
    %12 = vector.shape_cast %11 : vector<128xf32> to vector<1x128xf32>
    %cst_11 = arith.constant 1.562500e-02 : f32
    %13 = vector.broadcast %cst_11 : f32 to vector<1x128xf32>
    %14 = arith.mulf %12, %13 : vector<1x128xf32>
    %15 = arith.mulf %10, %10 : vector<64x128xf32>
    %cst_12 = arith.constant dense<0.000000e+00> : vector<128xf32>
    %16 = vector.multi_reduction <add>, %15, %cst_12 [0] : vector<64x128xf32> to vector<128xf32>
    %17 = vector.shape_cast %16 : vector<128xf32> to vector<1x128xf32>
    %cst_13 = arith.constant 1.562500e-02 : f32
    %18 = vector.broadcast %cst_13 : f32 to vector<1x128xf32>
    %19 = arith.mulf %17, %18 : vector<1x128xf32>
    %20 = arith.mulf %14, %14 : vector<1x128xf32>
    %21 = arith.subf %19, %20 : vector<1x128xf32>
    %cst_14 = arith.constant 0.000000e+00 : f32
    %22 = vector.broadcast %cst_14 : f32 to vector<1x128xf32>
    %23 = arith.maximumf %21, %22 : vector<1x128xf32>
    %24 = vector.broadcast %14 : vector<1x128xf32> to vector<64x128xf32>
    %25 = arith.subf %10, %24 : vector<64x128xf32>
    %cst_15 = arith.constant 9.99999974E-6 : f32
    %26 = vector.broadcast %cst_15 : f32 to vector<1x128xf32>
    %27 = arith.addf %23, %26 : vector<1x128xf32>
    %28 = math.rsqrt %27 : vector<1x128xf32>
    %29 = vector.broadcast %28 : vector<1x128xf32> to vector<64x128xf32>
    %30 = arith.mulf %25, %29 : vector<64x128xf32>
    %c0_16 = arith.constant 0 : index
    %c0_17 = arith.constant 0 : index
    %c0_18 = arith.constant 0 : index
    %31 = vector.load %arg4[%c0_16, %c0_17, %c0_18] : memref<3x1x128xf32, #tpu.memory_space<vmem>>, vector<1x1x128xf32>
    %32 = vector.shape_cast %31 : vector<1x1x128xf32> to vector<1x128xf32>
    %33 = vector.broadcast %32 : vector<1x128xf32> to vector<64x128xf32>
    %34 = arith.mulf %30, %33 : vector<64x128xf32>
    %c0_19 = arith.constant 0 : index
    %c0_20 = arith.constant 0 : index
    %c0_21 = arith.constant 0 : index
    %35 = vector.load %arg5[%c0_19, %c0_20, %c0_21] : memref<3x1x128xf32, #tpu.memory_space<vmem>>, vector<1x1x128xf32>
    %36 = vector.shape_cast %35 : vector<1x1x128xf32> to vector<1x128xf32>
    %37 = vector.broadcast %36 : vector<1x128xf32> to vector<64x128xf32>
    %38 = arith.addf %34, %37 : vector<64x128xf32>
    %c0_22 = arith.constant 0 : index
    %39 = memref.load %arg10[%c0_22] : memref<3xf32, #tpu.memory_space<smem>>
    %cst_23 = arith.constant 0.000000e+00 : f32
    %40 = vector.broadcast %cst_23 : f32 to vector<64x128xf32>
    %41 = arith.cmpf oge, %38, %40 : vector<64x128xf32>
    %42 = vector.broadcast %39 : f32 to vector<64x128xf32>
    %43 = arith.mulf %42, %38 : vector<64x128xf32>
    %44 = arith.select %41, %38, %43 : vector<64x128xi1>, vector<64x128xf32>
    %45 = arith.truncf %44 : vector<64x128xf32> to vector<64x128xbf16>
    %c0_24 = arith.constant 0 : index
    %c0_25 = arith.constant 0 : index
    %c0_26 = arith.constant 0 : index
    %46 = vector.load %arg6[%c0_24, %c0_25, %c0_26] : memref<3x128x128xbf16, #tpu.memory_space<vmem>>, vector<1x128x128xbf16>
    %47 = vector.shape_cast %46 : vector<1x128x128xbf16> to vector<128x128xbf16>
    %cst_27 = arith.constant dense<0.000000e+00> : vector<64x128xf32>
    %48 = tpu.matmul %45, %47, %cst_27 {dimension_numbers = #tpu.dot_dimension_numbers<[1], [0], [0], [1], [0, 0, 1, 1], [], []>} : vector<64x128xbf16>, vector<128x128xbf16>, vector<64x128xf32> -> vector<64x128xf32>
    %c0_28 = arith.constant 0 : index
    %c0_29 = arith.constant 0 : index
    %c0_30 = arith.constant 0 : index
    %49 = vector.load %arg7[%c0_28, %c0_29, %c0_30] : memref<3x1x128xf32, #tpu.memory_space<vmem>>, vector<1x1x128xf32>
    %50 = vector.shape_cast %49 : vector<1x1x128xf32> to vector<1x128xf32>
    %51 = vector.broadcast %50 : vector<1x128xf32> to vector<64x128xf32>
    %52 = arith.addf %48, %51 : vector<64x128xf32>
    %cst_31 = arith.constant dense<0.000000e+00> : vector<64xf32>
    %53 = vector.multi_reduction <add>, %52, %cst_31 [1] : vector<64x128xf32> to vector<64xf32>
    %54 = vector.shape_cast %53 : vector<64xf32> to vector<64x1xf32>
    %cst_32 = arith.constant 3.125000e-02 : f32
    %55 = vector.broadcast %cst_32 : f32 to vector<64x1xf32>
    %56 = arith.mulf %54, %55 : vector<64x1xf32>
    %57 = arith.mulf %52, %52 : vector<64x128xf32>
    %cst_33 = arith.constant dense<0.000000e+00> : vector<64xf32>
    %58 = vector.multi_reduction <add>, %57, %cst_33 [1] : vector<64x128xf32> to vector<64xf32>
    %59 = vector.shape_cast %58 : vector<64xf32> to vector<64x1xf32>
    %cst_34 = arith.constant 3.125000e-02 : f32
    %60 = vector.broadcast %cst_34 : f32 to vector<64x1xf32>
    %61 = arith.mulf %59, %60 : vector<64x1xf32>
    %62 = arith.mulf %56, %56 : vector<64x1xf32>
    %63 = arith.subf %61, %62 : vector<64x1xf32>
    %cst_35 = arith.constant 0.000000e+00 : f32
    %64 = vector.broadcast %cst_35 : f32 to vector<64x1xf32>
    %65 = arith.maximumf %63, %64 : vector<64x1xf32>
    %66 = vector.broadcast %56 : vector<64x1xf32> to vector<64x128xf32>
    %67 = arith.subf %52, %66 : vector<64x128xf32>
    %cst_36 = arith.constant 9.99999974E-6 : f32
    %68 = vector.broadcast %cst_36 : f32 to vector<64x1xf32>
    %69 = arith.addf %65, %68 : vector<64x1xf32>
    %70 = math.rsqrt %69 : vector<64x1xf32>
    %71 = vector.broadcast %70 : vector<64x1xf32> to vector<64x128xf32>
    %72 = arith.mulf %67, %71 : vector<64x128xf32>
    %c0_37 = arith.constant 0 : index
    %c0_38 = arith.constant 0 : index
    %c0_39 = arith.constant 0 : index
    %73 = vector.load %arg8[%c0_37, %c0_38, %c0_39] : memref<3x1x128xf32, #tpu.memory_space<vmem>>, vector<1x1x128xf32>
    %74 = vector.shape_cast %73 : vector<1x1x128xf32> to vector<1x128xf32>
    %75 = vector.broadcast %74 : vector<1x128xf32> to vector<64x128xf32>
    %76 = arith.mulf %72, %75 : vector<64x128xf32>
    %c0_40 = arith.constant 0 : index
    %c0_41 = arith.constant 0 : index
    %c0_42 = arith.constant 0 : index
    %77 = vector.load %arg9[%c0_40, %c0_41, %c0_42] : memref<3x1x128xf32, #tpu.memory_space<vmem>>, vector<1x1x128xf32>
    %78 = vector.shape_cast %77 : vector<1x1x128xf32> to vector<1x128xf32>
    %79 = vector.broadcast %78 : vector<1x128xf32> to vector<64x128xf32>
    %80 = arith.addf %76, %79 : vector<64x128xf32>
    %c0_43 = arith.constant 0 : index
    %81 = memref.load %arg11[%c0_43] : memref<3xf32, #tpu.memory_space<smem>>
    %cst_44 = arith.constant 0.000000e+00 : f32
    %82 = vector.broadcast %cst_44 : f32 to vector<64x128xf32>
    %83 = arith.cmpf oge, %80, %82 : vector<64x128xf32>
    %84 = vector.broadcast %81 : f32 to vector<64x128xf32>
    %85 = arith.mulf %84, %80 : vector<64x128xf32>
    %86 = arith.select %83, %80, %85 : vector<64x128xi1>, vector<64x128xf32>
    %87 = arith.truncf %86 : vector<64x128xf32> to vector<64x128xbf16>
    %cst_45 = arith.constant dense<0.000000e+00> : vector<64x128xf32>
    %88 = tpu.matmul %0, %87, %cst_45 {dimension_numbers = #tpu.dot_dimension_numbers<[1], [0], [0], [1], [0, 0, 1, 1], [], []>} : vector<64x64xbf16>, vector<64x128xbf16>, vector<64x128xf32> -> vector<64x128xf32>
    %89 = arith.truncf %88 : vector<64x128xf32> to vector<64x128xbf16>
    %c1 = arith.constant 1 : index
    %c0_46 = arith.constant 0 : index
    %c0_47 = arith.constant 0 : index
    %90 = vector.load %arg2[%c1, %c0_46, %c0_47] : memref<3x128x128xbf16, #tpu.memory_space<vmem>>, vector<1x128x128xbf16>
    %91 = vector.shape_cast %90 : vector<1x128x128xbf16> to vector<128x128xbf16>
    %cst_48 = arith.constant dense<0.000000e+00> : vector<64x128xf32>
    %92 = tpu.matmul %89, %91, %cst_48 {dimension_numbers = #tpu.dot_dimension_numbers<[1], [0], [0], [1], [0, 0, 1, 1], [], []>} : vector<64x128xbf16>, vector<128x128xbf16>, vector<64x128xf32> -> vector<64x128xf32>
    %c1_49 = arith.constant 1 : index
    %c0_50 = arith.constant 0 : index
    %c0_51 = arith.constant 0 : index
    %93 = vector.load %arg3[%c1_49, %c0_50, %c0_51] : memref<3x1x128xf32, #tpu.memory_space<vmem>>, vector<1x1x128xf32>
    %94 = vector.shape_cast %93 : vector<1x1x128xf32> to vector<1x128xf32>
    %95 = vector.broadcast %94 : vector<1x128xf32> to vector<64x128xf32>
    %96 = arith.addf %92, %95 : vector<64x128xf32>
    %cst_52 = arith.constant dense<0.000000e+00> : vector<128xf32>
    %97 = vector.multi_reduction <add>, %96, %cst_52 [0] : vector<64x128xf32> to vector<128xf32>
    %98 = vector.shape_cast %97 : vector<128xf32> to vector<1x128xf32>
    %cst_53 = arith.constant 1.562500e-02 : f32
    %99 = vector.broadcast %cst_53 : f32 to vector<1x128xf32>
    %100 = arith.mulf %98, %99 : vector<1x128xf32>
    %101 = arith.mulf %96, %96 : vector<64x128xf32>
    %cst_54 = arith.constant dense<0.000000e+00> : vector<128xf32>
    %102 = vector.multi_reduction <add>, %101, %cst_54 [0] : vector<64x128xf32> to vector<128xf32>
    %103 = vector.shape_cast %102 : vector<128xf32> to vector<1x128xf32>
    %cst_55 = arith.constant 1.562500e-02 : f32
    %104 = vector.broadcast %cst_55 : f32 to vector<1x128xf32>
    %105 = arith.mulf %103, %104 : vector<1x128xf32>
    %106 = arith.mulf %100, %100 : vector<1x128xf32>
    %107 = arith.subf %105, %106 : vector<1x128xf32>
    %cst_56 = arith.constant 0.000000e+00 : f32
    %108 = vector.broadcast %cst_56 : f32 to vector<1x128xf32>
    %109 = arith.maximumf %107, %108 : vector<1x128xf32>
    %110 = vector.broadcast %100 : vector<1x128xf32> to vector<64x128xf32>
    %111 = arith.subf %96, %110 : vector<64x128xf32>
    %cst_57 = arith.constant 9.99999974E-6 : f32
    %112 = vector.broadcast %cst_57 : f32 to vector<1x128xf32>
    %113 = arith.addf %109, %112 : vector<1x128xf32>
    %114 = math.rsqrt %113 : vector<1x128xf32>
    %115 = vector.broadcast %114 : vector<1x128xf32> to vector<64x128xf32>
    %116 = arith.mulf %111, %115 : vector<64x128xf32>
    %c1_58 = arith.constant 1 : index
    %c0_59 = arith.constant 0 : index
    %c0_60 = arith.constant 0 : index
    %117 = vector.load %arg4[%c1_58, %c0_59, %c0_60] : memref<3x1x128xf32, #tpu.memory_space<vmem>>, vector<1x1x128xf32>
    %118 = vector.shape_cast %117 : vector<1x1x128xf32> to vector<1x128xf32>
    %119 = vector.broadcast %118 : vector<1x128xf32> to vector<64x128xf32>
    %120 = arith.mulf %116, %119 : vector<64x128xf32>
    %c1_61 = arith.constant 1 : index
    %c0_62 = arith.constant 0 : index
    %c0_63 = arith.constant 0 : index
    %121 = vector.load %arg5[%c1_61, %c0_62, %c0_63] : memref<3x1x128xf32, #tpu.memory_space<vmem>>, vector<1x1x128xf32>
    %122 = vector.shape_cast %121 : vector<1x1x128xf32> to vector<1x128xf32>
    %123 = vector.broadcast %122 : vector<1x128xf32> to vector<64x128xf32>
    %124 = arith.addf %120, %123 : vector<64x128xf32>
    %c1_64 = arith.constant 1 : index
    %125 = memref.load %arg10[%c1_64] : memref<3xf32, #tpu.memory_space<smem>>
    %cst_65 = arith.constant 0.000000e+00 : f32
    %126 = vector.broadcast %cst_65 : f32 to vector<64x128xf32>
    %127 = arith.cmpf oge, %124, %126 : vector<64x128xf32>
    %128 = vector.broadcast %125 : f32 to vector<64x128xf32>
    %129 = arith.mulf %128, %124 : vector<64x128xf32>
    %130 = arith.select %127, %124, %129 : vector<64x128xi1>, vector<64x128xf32>
    %131 = arith.truncf %130 : vector<64x128xf32> to vector<64x128xbf16>
    %c1_66 = arith.constant 1 : index
    %c0_67 = arith.constant 0 : index
    %c0_68 = arith.constant 0 : index
    %132 = vector.load %arg6[%c1_66, %c0_67, %c0_68] : memref<3x128x128xbf16, #tpu.memory_space<vmem>>, vector<1x128x128xbf16>
    %133 = vector.shape_cast %132 : vector<1x128x128xbf16> to vector<128x128xbf16>
    %cst_69 = arith.constant dense<0.000000e+00> : vector<64x128xf32>
    %134 = tpu.matmul %131, %133, %cst_69 {dimension_numbers = #tpu.dot_dimension_numbers<[1], [0], [0], [1], [0, 0, 1, 1], [], []>} : vector<64x128xbf16>, vector<128x128xbf16>, vector<64x128xf32> -> vector<64x128xf32>
    %c1_70 = arith.constant 1 : index
    %c0_71 = arith.constant 0 : index
    %c0_72 = arith.constant 0 : index
    %135 = vector.load %arg7[%c1_70, %c0_71, %c0_72] : memref<3x1x128xf32, #tpu.memory_space<vmem>>, vector<1x1x128xf32>
    %136 = vector.shape_cast %135 : vector<1x1x128xf32> to vector<1x128xf32>
    %137 = vector.broadcast %136 : vector<1x128xf32> to vector<64x128xf32>
    %138 = arith.addf %134, %137 : vector<64x128xf32>
    %cst_73 = arith.constant dense<0.000000e+00> : vector<64xf32>
    %139 = vector.multi_reduction <add>, %138, %cst_73 [1] : vector<64x128xf32> to vector<64xf32>
    %140 = vector.shape_cast %139 : vector<64xf32> to vector<64x1xf32>
    %cst_74 = arith.constant 3.125000e-02 : f32
    %141 = vector.broadcast %cst_74 : f32 to vector<64x1xf32>
    %142 = arith.mulf %140, %141 : vector<64x1xf32>
    %143 = arith.mulf %138, %138 : vector<64x128xf32>
    %cst_75 = arith.constant dense<0.000000e+00> : vector<64xf32>
    %144 = vector.multi_reduction <add>, %143, %cst_75 [1] : vector<64x128xf32> to vector<64xf32>
    %145 = vector.shape_cast %144 : vector<64xf32> to vector<64x1xf32>
    %cst_76 = arith.constant 3.125000e-02 : f32
    %146 = vector.broadcast %cst_76 : f32 to vector<64x1xf32>
    %147 = arith.mulf %145, %146 : vector<64x1xf32>
    %148 = arith.mulf %142, %142 : vector<64x1xf32>
    %149 = arith.subf %147, %148 : vector<64x1xf32>
    %cst_77 = arith.constant 0.000000e+00 : f32
    %150 = vector.broadcast %cst_77 : f32 to vector<64x1xf32>
    %151 = arith.maximumf %149, %150 : vector<64x1xf32>
    %152 = vector.broadcast %142 : vector<64x1xf32> to vector<64x128xf32>
    %153 = arith.subf %138, %152 : vector<64x128xf32>
    %cst_78 = arith.constant 9.99999974E-6 : f32
    %154 = vector.broadcast %cst_78 : f32 to vector<64x1xf32>
    %155 = arith.addf %151, %154 : vector<64x1xf32>
    %156 = math.rsqrt %155 : vector<64x1xf32>
    %157 = vector.broadcast %156 : vector<64x1xf32> to vector<64x128xf32>
    %158 = arith.mulf %153, %157 : vector<64x128xf32>
    %c1_79 = arith.constant 1 : index
    %c0_80 = arith.constant 0 : index
    %c0_81 = arith.constant 0 : index
    %159 = vector.load %arg8[%c1_79, %c0_80, %c0_81] : memref<3x1x128xf32, #tpu.memory_space<vmem>>, vector<1x1x128xf32>
    %160 = vector.shape_cast %159 : vector<1x1x128xf32> to vector<1x128xf32>
    %161 = vector.broadcast %160 : vector<1x128xf32> to vector<64x128xf32>
    %162 = arith.mulf %158, %161 : vector<64x128xf32>
    %c1_82 = arith.constant 1 : index
    %c0_83 = arith.constant 0 : index
    %c0_84 = arith.constant 0 : index
    %163 = vector.load %arg9[%c1_82, %c0_83, %c0_84] : memref<3x1x128xf32, #tpu.memory_space<vmem>>, vector<1x1x128xf32>
    %164 = vector.shape_cast %163 : vector<1x1x128xf32> to vector<1x128xf32>
    %165 = vector.broadcast %164 : vector<1x128xf32> to vector<64x128xf32>
    %166 = arith.addf %162, %165 : vector<64x128xf32>
    %c1_85 = arith.constant 1 : index
    %167 = memref.load %arg11[%c1_85] : memref<3xf32, #tpu.memory_space<smem>>
    %cst_86 = arith.constant 0.000000e+00 : f32
    %168 = vector.broadcast %cst_86 : f32 to vector<64x128xf32>
    %169 = arith.cmpf oge, %166, %168 : vector<64x128xf32>
    %170 = vector.broadcast %167 : f32 to vector<64x128xf32>
    %171 = arith.mulf %170, %166 : vector<64x128xf32>
    %172 = arith.select %169, %166, %171 : vector<64x128xi1>, vector<64x128xf32>
    %173 = arith.truncf %172 : vector<64x128xf32> to vector<64x128xbf16>
    %cst_87 = arith.constant dense<0.000000e+00> : vector<64x128xf32>
    %174 = tpu.matmul %0, %173, %cst_87 {dimension_numbers = #tpu.dot_dimension_numbers<[1], [0], [0], [1], [0, 0, 1, 1], [], []>} : vector<64x64xbf16>, vector<64x128xbf16>, vector<64x128xf32> -> vector<64x128xf32>
    %175 = arith.truncf %174 : vector<64x128xf32> to vector<64x128xbf16>
    %c2 = arith.constant 2 : index
    %c0_88 = arith.constant 0 : index
    %c0_89 = arith.constant 0 : index
    %176 = vector.load %arg2[%c2, %c0_88, %c0_89] : memref<3x128x128xbf16, #tpu.memory_space<vmem>>, vector<1x128x128xbf16>
    %177 = vector.shape_cast %176 : vector<1x128x128xbf16> to vector<128x128xbf16>
    %cst_90 = arith.constant dense<0.000000e+00> : vector<64x128xf32>
    %178 = tpu.matmul %175, %177, %cst_90 {dimension_numbers = #tpu.dot_dimension_numbers<[1], [0], [0], [1], [0, 0, 1, 1], [], []>} : vector<64x128xbf16>, vector<128x128xbf16>, vector<64x128xf32> -> vector<64x128xf32>
    %c2_91 = arith.constant 2 : index
    %c0_92 = arith.constant 0 : index
    %c0_93 = arith.constant 0 : index
    %179 = vector.load %arg3[%c2_91, %c0_92, %c0_93] : memref<3x1x128xf32, #tpu.memory_space<vmem>>, vector<1x1x128xf32>
    %180 = vector.shape_cast %179 : vector<1x1x128xf32> to vector<1x128xf32>
    %181 = vector.broadcast %180 : vector<1x128xf32> to vector<64x128xf32>
    %182 = arith.addf %178, %181 : vector<64x128xf32>
    %cst_94 = arith.constant dense<0.000000e+00> : vector<128xf32>
    %183 = vector.multi_reduction <add>, %182, %cst_94 [0] : vector<64x128xf32> to vector<128xf32>
    %184 = vector.shape_cast %183 : vector<128xf32> to vector<1x128xf32>
    %cst_95 = arith.constant 1.562500e-02 : f32
    %185 = vector.broadcast %cst_95 : f32 to vector<1x128xf32>
    %186 = arith.mulf %184, %185 : vector<1x128xf32>
    %187 = arith.mulf %182, %182 : vector<64x128xf32>
    %cst_96 = arith.constant dense<0.000000e+00> : vector<128xf32>
    %188 = vector.multi_reduction <add>, %187, %cst_96 [0] : vector<64x128xf32> to vector<128xf32>
    %189 = vector.shape_cast %188 : vector<128xf32> to vector<1x128xf32>
    %cst_97 = arith.constant 1.562500e-02 : f32
    %190 = vector.broadcast %cst_97 : f32 to vector<1x128xf32>
    %191 = arith.mulf %189, %190 : vector<1x128xf32>
    %192 = arith.mulf %186, %186 : vector<1x128xf32>
    %193 = arith.subf %191, %192 : vector<1x128xf32>
    %cst_98 = arith.constant 0.000000e+00 : f32
    %194 = vector.broadcast %cst_98 : f32 to vector<1x128xf32>
    %195 = arith.maximumf %193, %194 : vector<1x128xf32>
    %196 = vector.broadcast %186 : vector<1x128xf32> to vector<64x128xf32>
    %197 = arith.subf %182, %196 : vector<64x128xf32>
    %cst_99 = arith.constant 9.99999974E-6 : f32
    %198 = vector.broadcast %cst_99 : f32 to vector<1x128xf32>
    %199 = arith.addf %195, %198 : vector<1x128xf32>
    %200 = math.rsqrt %199 : vector<1x128xf32>
    %201 = vector.broadcast %200 : vector<1x128xf32> to vector<64x128xf32>
    %202 = arith.mulf %197, %201 : vector<64x128xf32>
    %c2_100 = arith.constant 2 : index
    %c0_101 = arith.constant 0 : index
    %c0_102 = arith.constant 0 : index
    %203 = vector.load %arg4[%c2_100, %c0_101, %c0_102] : memref<3x1x128xf32, #tpu.memory_space<vmem>>, vector<1x1x128xf32>
    %204 = vector.shape_cast %203 : vector<1x1x128xf32> to vector<1x128xf32>
    %205 = vector.broadcast %204 : vector<1x128xf32> to vector<64x128xf32>
    %206 = arith.mulf %202, %205 : vector<64x128xf32>
    %c2_103 = arith.constant 2 : index
    %c0_104 = arith.constant 0 : index
    %c0_105 = arith.constant 0 : index
    %207 = vector.load %arg5[%c2_103, %c0_104, %c0_105] : memref<3x1x128xf32, #tpu.memory_space<vmem>>, vector<1x1x128xf32>
    %208 = vector.shape_cast %207 : vector<1x1x128xf32> to vector<1x128xf32>
    %209 = vector.broadcast %208 : vector<1x128xf32> to vector<64x128xf32>
    %210 = arith.addf %206, %209 : vector<64x128xf32>
    %c2_106 = arith.constant 2 : index
    %211 = memref.load %arg10[%c2_106] : memref<3xf32, #tpu.memory_space<smem>>
    %cst_107 = arith.constant 0.000000e+00 : f32
    %212 = vector.broadcast %cst_107 : f32 to vector<64x128xf32>
    %213 = arith.cmpf oge, %210, %212 : vector<64x128xf32>
    %214 = vector.broadcast %211 : f32 to vector<64x128xf32>
    %215 = arith.mulf %214, %210 : vector<64x128xf32>
    %216 = arith.select %213, %210, %215 : vector<64x128xi1>, vector<64x128xf32>
    %217 = arith.truncf %216 : vector<64x128xf32> to vector<64x128xbf16>
    %c2_108 = arith.constant 2 : index
    %c0_109 = arith.constant 0 : index
    %c0_110 = arith.constant 0 : index
    %218 = vector.load %arg6[%c2_108, %c0_109, %c0_110] : memref<3x128x128xbf16, #tpu.memory_space<vmem>>, vector<1x128x128xbf16>
    %219 = vector.shape_cast %218 : vector<1x128x128xbf16> to vector<128x128xbf16>
    %cst_111 = arith.constant dense<0.000000e+00> : vector<64x128xf32>
    %220 = tpu.matmul %217, %219, %cst_111 {dimension_numbers = #tpu.dot_dimension_numbers<[1], [0], [0], [1], [0, 0, 1, 1], [], []>} : vector<64x128xbf16>, vector<128x128xbf16>, vector<64x128xf32> -> vector<64x128xf32>
    %c2_112 = arith.constant 2 : index
    %c0_113 = arith.constant 0 : index
    %c0_114 = arith.constant 0 : index
    %221 = vector.load %arg7[%c2_112, %c0_113, %c0_114] : memref<3x1x128xf32, #tpu.memory_space<vmem>>, vector<1x1x128xf32>
    %222 = vector.shape_cast %221 : vector<1x1x128xf32> to vector<1x128xf32>
    %223 = vector.broadcast %222 : vector<1x128xf32> to vector<64x128xf32>
    %224 = arith.addf %220, %223 : vector<64x128xf32>
    %cst_115 = arith.constant dense<0.000000e+00> : vector<64xf32>
    %225 = vector.multi_reduction <add>, %224, %cst_115 [1] : vector<64x128xf32> to vector<64xf32>
    %226 = vector.shape_cast %225 : vector<64xf32> to vector<64x1xf32>
    %cst_116 = arith.constant 3.125000e-02 : f32
    %227 = vector.broadcast %cst_116 : f32 to vector<64x1xf32>
    %228 = arith.mulf %226, %227 : vector<64x1xf32>
    %229 = arith.mulf %224, %224 : vector<64x128xf32>
    %cst_117 = arith.constant dense<0.000000e+00> : vector<64xf32>
    %230 = vector.multi_reduction <add>, %229, %cst_117 [1] : vector<64x128xf32> to vector<64xf32>
    %231 = vector.shape_cast %230 : vector<64xf32> to vector<64x1xf32>
    %cst_118 = arith.constant 3.125000e-02 : f32
    %232 = vector.broadcast %cst_118 : f32 to vector<64x1xf32>
    %233 = arith.mulf %231, %232 : vector<64x1xf32>
    %234 = arith.mulf %228, %228 : vector<64x1xf32>
    %235 = arith.subf %233, %234 : vector<64x1xf32>
    %cst_119 = arith.constant 0.000000e+00 : f32
    %236 = vector.broadcast %cst_119 : f32 to vector<64x1xf32>
    %237 = arith.maximumf %235, %236 : vector<64x1xf32>
    %238 = vector.broadcast %228 : vector<64x1xf32> to vector<64x128xf32>
    %239 = arith.subf %224, %238 : vector<64x128xf32>
    %cst_120 = arith.constant 9.99999974E-6 : f32
    %240 = vector.broadcast %cst_120 : f32 to vector<64x1xf32>
    %241 = arith.addf %237, %240 : vector<64x1xf32>
    %242 = math.rsqrt %241 : vector<64x1xf32>
    %243 = vector.broadcast %242 : vector<64x1xf32> to vector<64x128xf32>
    %244 = arith.mulf %239, %243 : vector<64x128xf32>
    %c2_121 = arith.constant 2 : index
    %c0_122 = arith.constant 0 : index
    %c0_123 = arith.constant 0 : index
    %245 = vector.load %arg8[%c2_121, %c0_122, %c0_123] : memref<3x1x128xf32, #tpu.memory_space<vmem>>, vector<1x1x128xf32>
    %246 = vector.shape_cast %245 : vector<1x1x128xf32> to vector<1x128xf32>
    %247 = vector.broadcast %246 : vector<1x128xf32> to vector<64x128xf32>
    %248 = arith.mulf %244, %247 : vector<64x128xf32>
    %c2_124 = arith.constant 2 : index
    %c0_125 = arith.constant 0 : index
    %c0_126 = arith.constant 0 : index
    %249 = vector.load %arg9[%c2_124, %c0_125, %c0_126] : memref<3x1x128xf32, #tpu.memory_space<vmem>>, vector<1x1x128xf32>
    %250 = vector.shape_cast %249 : vector<1x1x128xf32> to vector<1x128xf32>
    %251 = vector.broadcast %250 : vector<1x128xf32> to vector<64x128xf32>
    %252 = arith.addf %248, %251 : vector<64x128xf32>
    %c2_127 = arith.constant 2 : index
    %253 = memref.load %arg11[%c2_127] : memref<3xf32, #tpu.memory_space<smem>>
    %cst_128 = arith.constant 0.000000e+00 : f32
    %254 = vector.broadcast %cst_128 : f32 to vector<64x128xf32>
    %255 = arith.cmpf oge, %252, %254 : vector<64x128xf32>
    %256 = vector.broadcast %253 : f32 to vector<64x128xf32>
    %257 = arith.mulf %256, %252 : vector<64x128xf32>
    %258 = arith.select %255, %252, %257 : vector<64x128xi1>, vector<64x128xf32>
    %c0_129 = arith.constant 0 : index
    %c0_130 = arith.constant 0 : index
    %259 = vector.load %arg12[%c0_129, %c0_130] : memref<64x128xf32, #tpu.memory_space<vmem>>, vector<64x128xf32>
    tpu.vector_store %arg12[%c0_129, %c0_130], %258 {strides = array<i32>} : memref<64x128xf32, #tpu.memory_space<vmem>>, vector<64x128xf32>,
    return
  }
}

</mosaic_0001>

<bundles_post_ra>
// kernel: gin_forward.1
= control target key start
LH: loop header
LB: loop body
LE: loop exit
PB: predicated region body
PF: predicated region fallthrough
CT: control target
= control target key end

     0   :  { %17 = vsyncpa [#allocation3], 0  ;;  %s3398_s0 = inlined_call_operand.vmem [shape: bf16[64,64], index: 0, kind: input, shape index: {}]   ;;  %s3399_s1 = inlined_call_operand.vmem [shape: bf16[64,128], index: 1, kind: input, shape index: {}]   ;;  %s3400_s2 = inlined_call_operand.vmem [shape: bf16[3,128,128], index: 2, kind: input, shape index: {}]   ;;  %s3401_s3 = inlined_call_operand.vmem [shape: f32[3,1,128], index: 3, kind: input, shape index: {}]   ;;  %s3402_s4 = inlined_call_operand.vmem [shape: f32[3,1,128], index: 4, kind: input, shape index: {}]   ;;  %s3403_s5 = inlined_call_operand.vmem [shape: f32[3,1,128], index: 5, kind: input, shape index: {}]   ;;  %s3404_s6 = inlined_call_operand.vmem [shape: bf16[3,128,128], index: 6, kind: input, shape index: {}]   ;;  %s3405_s7 = inlined_call_operand.vmem [shape: f32[3,1,128], index: 7, kind: input, shape index: {}]   ;;  %s3406_s8 = inlined_call_operand.vmem [shape: f32[3,1,128], index: 8, kind: input, shape index: {}]   ;;  %s3407_s9 = inlined_call_operand.vmem [shape: f32[3,1,128], index: 9, kind: input, shape index: {}]   ;;  %s3408_s10 = inlined_call_operand.vmem [shape: f32[3], index: 10, kind: input, shape index: {}]   ;;  %s3409_s11 = inlined_call_operand.vmem [shape: f32[3], index: 11, kind: input, shape index: {}]   ;;  %s3410_s12 = inlined_call_operand.vmem [shape: f32[64,128], index: 12, kind: output, shape index: {}]  }
   0x1   :  { %s44_s23 = sshll.u32 %s3408_s10, 4  ;;  %s45_s23 = int_to_ptr.vmem [resolvable:$true] %s44_s23 }
   0x2   :  { %18 = vsyncpa [#allocation5], 0  ;;  %s53_s26 = sshll.u32 %s3409_s11, 4  ;;  %s2403_s27 = smov [#allocation2]   ;;  %s54_s26 = int_to_ptr.vmem [resolvable:$true] %s53_s26 }
   0x3   :  { %47 = dma.vmem_to_smem %s45_s23, 16, %s2403_s27, [#allocation3]  }
   0x4   :  { %s2404_s28 = smov [#allocation4]  }
   0x5   :  { %56 = dma.vmem_to_smem %s54_s26, 16, %s2404_s28, [#allocation5]  }
   0x6   :  { %2399 = dma.done.wait [#allocation3], 16  }
   0x7   :  { %2400 = vsyncadd [#allocation3], 4294967280 }
   0x8   :  { %2401 = dma.done.wait [#allocation5], 16  }
   0x9   :  { %2402 = vsyncadd [#allocation5], 4294967280 }
   0xa   :  { %65 = sfence }
   0xb   :  { %v2244_v0 = vld [vmem:[%s3399_s1 + $0x18] sm:$0xff]  ;;  %v2243_v1 = vld [vmem:[%s3399_s1 + $0x10] sm:$0xff]  ;;  %v2242_v3 = vld [vmem:[%s3399_s1 + $0x8] sm:$0xff]  ;;  %vm127_vm0 = vcmask 523264   ;;  %s360_s17 = sld [smem:[#allocation2]] }
   0xc   :  { %144 = vmatpush.bf16.msra.mxu0 %v2244_v0  ;;  %2293 = vmatpush.bf16.msra.mxu3 %v2244_v0  ;;  %v2252_v2 = vld [vmem:[%s3400_s2 + $0x38] sm:$0xff]  ;;  %v2251_v4 = vld [vmem:[%s3400_s2 + $0x30] sm:$0xff]  ;;  %v2250_v5 = vld [vmem:[%s3400_s2 + $0x28] sm:$0xff]  ;;  %s2774_s26 = sld [smem:[#allocation4]] }
   0xd   :  { %241 = vmatpush.bf16.msra.mxu1 %v2252_v2  ;;  %v2241_v6 = vld [vmem:[%s3399_s1] sm:$0xff]  ;;  %v2508_v9 = vld [vmem:[%s3398_s0 + $0x10] sm:$0xff]  ;;  %v2248_v10 = vld [vmem:[%s3400_s2 + $0x18] sm:$0xff]  ;;  %s2076_s21 = sld [smem:[#allocation2 + $0x1]] }
   0xe   :  { %v2249_v7 = vld [vmem:[%s3400_s2 + $0x20] sm:$0xff]  ;;  %v2520_v11 = vld [vmem:[%s3398_s0 + $0x8] sm:$0xff]  ;;  %v2525_v12 = vld [vmem:[%s3398_s0 + $0x18] sm:$0xff]  ;;  %s3044_s28 = sld [smem:[#allocation4 + $0x1]] }
   0xf   :  { %v2503_v8 = vld [vmem:[%s3398_s0] sm:$0xff]  ;;  %v2247_v13 = vld [vmem:[%s3400_s2 + $0x10] sm:$0xff]  ;;  %v2246_v14 = vld [vmem:[%s3400_s2 + $0x8] sm:$0xff]  ;;  %s2184_s29 = sld [smem:[#allocation2 + $0x2]] }
  0x10   :  { %145 = vmatpush.bf16.msra.mxu0 %v2243_v1  ;;  %2294 = vmatpush.bf16.msra.mxu3 %v2243_v1  ;;  %v2245_v15 = vld [vmem:[%s3400_s2] sm:$0xff]  ;;  %v2260_v44 = vld [vmem:[%s3404_s6 + $0x38] sm:$0xff]  ;;  %v2259_v54 = vld [vmem:[%s3404_s6 + $0x30] sm:$0xff] }
  0x11   :  { %242 = vmatpush.bf16.msra.mxu1 %v2251_v4  ;;  %v2299_v33 = vld [vmem:[%s3401_s3] ss:$0 sm:$0xff]  ;;  %458 = vmatpush.bf16.msra.mxu2 %v2260_v44  ;;  %v2258_v61 = vld [vmem:[%s3404_s6 + $0x28] sm:$0xff] }
  0x14   :  { %146 = vmatpush.bf16.msra.mxu0 %v2242_v3  ;;  %2295 = vmatpush.bf16.msra.mxu3 %v2242_v3 }
  0x15   :  { %243 = vmatpush.bf16.msra.mxu1 %v2250_v5  ;;  %459 = vmatpush.bf16.msra.mxu2 %v2259_v54  ;;  %v2257_v5 = vld [vmem:[%s3404_s6 + $0x20] sm:$0xff] }
  0x18   :  { %147 = vmatpush.bf16.msra.mxu0 %v2241_v6  ;;  %2296 = vmatpush.bf16.msra.mxu3 %v2241_v6 }
  0x19   :  { %244 = vmatpush.bf16.msra.mxu1 %v2249_v7  ;;  %460 = vmatpush.bf16.msra.mxu2 %v2258_v61 }
  0x1b   :  { %1953 = vmatmul.msk.bf16.vlgmr.msra.gmra.mxu0 %vm127_vm0, %v2503_v8  ;;  %1955 = vmatmul.msk.bf16.vlgmr.msra.gmra.mxu3 %vm127_vm0, %v2508_v9 }
  0x1d   :  { %245 = vmatpush.bf16.msra.mxu1 %v2248_v10  ;;  %461 = vmatpush.bf16.msra.mxu2 %v2257_v5 }
  0x21   :  { %246 = vmatpush.bf16.msra.mxu1 %v2247_v13 }
  0x25   :  { %247 = vmatpush.bf16.msra.mxu1 %v2246_v14  ;;  %v2256_v14 = vld [vmem:[%s3404_s6 + $0x18] sm:$0xff] }
  0x26   :  { %462 = vmatpush.bf16.msra.mxu2 %v2256_v14 }
  0x29   :  { %248 = vmatpush.bf16.msra.mxu1 %v2245_v15 }
  0x2b   :  { %1954 = vmatmul.msk.bf16.gmra.mxu0 %vm127_vm0, %v2520_v11  ;;  %1956 = vmatmul.msk.bf16.gmra.mxu3 %vm127_vm0, %v2525_v12 }
  0x98   :  { %v149_v16 = vpop.f32.mrf.mxu0 }
  0x9e   :  { %v159_v21 = vpop.f32.mrf.mxu3 }
  0xa0   :  { %v151_v17 = vpop.f32.mrf.mxu0 }
  0xa1   :  { %v169_v18 = vpack.c.bf16 %v151_v17, %v149_v16 }
  0xa3   :  { %249 = vmatmul.bf16.vlgmr.msra.gmra.mxu1 %v169_v18 }
  0xa6   :  { %v161_v23 = vpop.f32.mrf.mxu3 }
  0xa7   :  { %v171_v24 = vpack.c.bf16 %v161_v23, %v159_v21 }
  0xa8   :  { %v154_v19 = vpop.f32.mrf.mxu0 }
  0xae   :  { %v164_v25 = vpop.f32.mrf.mxu3 }
  0xb0   :  { %v156_v20 = vpop.f32.mrf.mxu0 }
  0xb1   :  { %v170_v22 = vpack.c.bf16 %v156_v20, %v154_v19  ;;  %v2255_v19 = vld [vmem:[%s3404_s6 + $0x10] sm:$0xff] }
  0xb2   :  { %463 = vmatpush.bf16.msra.mxu2 %v2255_v19 }
  0xb3   :  { %254 = vmatmul.bf16.gmra.mxu1 %v170_v22  ;;  %v2254_v22 = vld [vmem:[%s3404_s6 + $0x8] sm:$0xff] }
  0xb6   :  { %v166_v26 = vpop.f32.mrf.mxu3  ;;  %464 = vmatpush.bf16.msra.mxu2 %v2254_v22 }
  0xb7   :  { %v172_v27 = vpack.c.bf16 %v166_v26, %v164_v25 }
  0xc3   :  { %259 = vmatmul.bf16.gmra.mxu1 %v171_v24 }
  0xd3   :  { %264 = vmatmul.bf16.gmra.mxu1 %v172_v27  ;;  %v2253_v27 = vld [vmem:[%s3404_s6] sm:$0xff] }
  0xd4   :  { %465 = vmatpush.bf16.msra.mxu2 %v2253_v27 }
 0x120   :  { %v250_v28 = vpop.f32.mrf.mxu1 }
 0x121   :  { %v2545_v36 = vadd.f32 %v2299_v33, %v250_v28 }
 0x123   :  { %v284_v40 = vmul.f32 %v2545_v36, %v2545_v36 }
 0x128   :  { %v252_v29 = vpop.f32.mrf.mxu1 }
 0x129   :  { %v2543_v35 = vadd.f32 %v2299_v33, %v252_v29 }
 0x12b   :  { %v285_v38 = vmul.f32 %v2543_v35, %v2543_v35  ;;  %v270_v41 = vadd.f32 %v2543_v35, %v2545_v36 }
 0x12d   :  { %v292_v46 = vadd.f32 %v285_v38, %v284_v40 }
 0x130   :  { %v255_v30 = vpop.f32.mrf.mxu1 }
 0x131   :  { %v2547_v37 = vadd.f32 %v2299_v33, %v255_v30 }
 0x133   :  { %v286_v42 = vmul.f32 %v2547_v37, %v2547_v37  ;;  %v271_v47 = vadd.f32 %v270_v41, %v2547_v37 }
 0x135   :  { %v293_v50 = vadd.f32 %v292_v46, %v286_v42 }
 0x138   :  { %v257_v31 = vpop.f32.mrf.mxu1 }
 0x139   :  { %v2551_v39 = vadd.f32 %v2299_v33, %v257_v31 }
 0x13b   :  { %v287_v48 = vmul.f32 %v2551_v39, %v2551_v39  ;;  %v272_v51 = vadd.f32 %v271_v47, %v2551_v39 }
 0x13d   :  { %v294_v55 = vadd.f32 %v293_v50, %v287_v48  ;;  %v2300_v48 = vld [vmem:[%s3402_s4] ss:$0 sm:$0xff]  ;;  %v369_v50 = vstv %s360_s17 }
 0x140   :  { %v260_v32 = vpop.f32.mrf.mxu1 }
 0x141   :  { %v2559_v43 = vadd.f32 %v2299_v33, %v260_v32 }
 0x143   :  { %v288_v52 = vmul.f32 %v2559_v43, %v2559_v43  ;;  %v273_v56 = vadd.f32 %v272_v51, %v2559_v43 }
 0x145   :  { %v295_v58 = vadd.f32 %v294_v55, %v288_v52 }
 0x148   :  { %v262_v34 = vpop.f32.mrf.mxu1 }
 0x149   :  { %v2567_v49 = vadd.f32 %v2299_v33, %v262_v34 }
 0x14b   :  { %v289_v57 = vmul.f32 %v2567_v49, %v2567_v49  ;;  %v274_v59 = vadd.f32 %v273_v56, %v2567_v49 }
 0x14d   :  { %v296_v63 = vadd.f32 %v295_v58, %v289_v57 }
 0x150   :  { %v265_v45 = vpop.f32.mrf.mxu1 }
 0x151   :  { %v2572_v53 = vadd.f32 %v2299_v33, %v265_v45 }
 0x153   :  { %v290_v60 = vmul.f32 %v2572_v53, %v2572_v53  ;;  %v275_v0 = vadd.f32 %v274_v59, %v2572_v53 }
 0x155   :  { %v297_v2 = vadd.f32 %v296_v63, %v290_v60 }
 0x158   :  { %v267_v62 = vpop.f32.mrf.mxu1 }
 0x159   :  { %v268_v1 = vadd.f32 %v2299_v33, %v267_v62 }
 0x15b   :  { %v276_v3 = vadd.f32 %v275_v0, %v268_v1  ;;  %v291_v4 = vmul.f32 %v268_v1, %v268_v1 }
 0x15d   :  { %v277_v6 = vrot.slane %v276_v3, 4  ;;  %v298_v7 = vadd.f32 %v297_v2, %v291_v4 }
 0x15f   :  { %v278_v10 = vadd.f32 %v277_v6, %v276_v3  ;;  %v299_v13 = vrot.slane %v298_v7, 4 }
 0x161   :  { %v279_v15 = vrot.slane %v278_v10, 2  ;;  %v300_v16 = vadd.f32 %v299_v13, %v298_v7 }
 0x163   :  { %v280_v17 = vadd.f32 %v279_v15, %v278_v10  ;;  %v301_v18 = vrot.slane %v300_v16, 2 }
 0x165   :  { %v281_v20 = vrot.slane %v280_v17, 1  ;;  %v302_v21 = vadd.f32 %v301_v18, %v300_v16 }
 0x167   :  { %v282_v23 = vadd.f32 %v281_v20, %v280_v17  ;;  %v303_v24 = vrot.slane %v302_v21, 1 }
 0x169   :  { %v283_v25 = vmul.f32 0.015625, %v282_v23  ;;  %v304_v26 = vadd.f32 %v303_v24, %v302_v21 }
 0x16b   :  { %v305_v28 = vmul.f32 0.015625, %v304_v26  ;;  %v306_v29 = vmul.f32 %v283_v25, %v283_v25  ;;  %v316_v30 = vsub.f32 %v268_v1, %v283_v25  ;;  %v315_v32 = vsub.f32 %v2572_v53, %v283_v25 }
 0x16c   :  { %v309_v46 = vsub.f32 %v2545_v36, %v283_v25  ;;  %v310_v47 = vsub.f32 %v2543_v35, %v283_v25  ;;  %v311_v51 = vsub.f32 %v2547_v37, %v283_v25  ;;  %v312_v53 = vsub.f32 %v2551_v39, %v283_v25  ;;  %v2301_v35 = vld [vmem:[%s3403_s5] ss:$0 sm:$0xff] }
 0x16d   :  { %v307_v31 = vsub.f32 %v305_v28, %v306_v29  ;;  %v313_v54 = vsub.f32 %v2559_v43, %v283_v25  ;;  %v314_v55 = vsub.f32 %v2567_v49, %v283_v25 }
 0x16f   :  { %v308_v33 = vmax.f32 %v307_v31, 0.0 }
 0x171   :  { %v317_v34 = vadd.f32 1e-05, %v308_v33 }
 0x173   :  { %2317 = vrsqrt.f32 %v317_v34  ;;  %vm324_vm2 = vweird.f32 %v317_v34 }
 0x179   :  { %v2318_v38 = vpop.eup %2317 }
 0x17a   :  { %v319_v40 = vmul.f32 %v2318_v38, %v317_v34  ;;  %vm325_vm1 = vweird.f32 %v2318_v38 }
 0x17b   :  { %vm326_vm3 = vmor %vm324_vm2, %vm325_vm1 }
 0x17c   :  { %v320_v41 = vmul.f32 %v2318_v38, %v319_v40 }
 0x17e   :  { %v321_v42 = vmul.f32 0.5, %v320_v41  ;;  %v2302_v41 = vld [vmem:[%s3405_s7] ss:$0 sm:$0xff] }
 0x180   :  { %v322_v44 = vsub.f32 1.5, %v321_v42 }
 0x182   :  { %v323_v45 = vmul.f32 %v2318_v38, %v322_v44 }
 0x184   :  { %v327_v52 = vsel %vm326_vm3, %v2318_v38, %v323_v45 }
 0x185   :  { %v335_v56 = vmul.f32 %v327_v52, %v316_v30  ;;  %v328_v57 = vmul.f32 %v327_v52, %v309_v46  ;;  %v329_v58 = vmul.f32 %v327_v52, %v310_v47  ;;  %v330_v36 = vmul.f32 %v327_v52, %v311_v51 }
 0x186   :  { %v331_v59 = vmul.f32 %v327_v52, %v312_v53  ;;  %v332_v60 = vmul.f32 %v327_v52, %v313_v54  ;;  %v333_v61 = vmul.f32 %v327_v52, %v314_v55  ;;  %v334_v62 = vmul.f32 %v327_v52, %v315_v32 }
 0x187   :  { %v340_v37 = vmul.f32 %v2300_v48, %v328_v57  ;;  %v341_v63 = vmul.f32 %v2300_v48, %v329_v58  ;;  %v342_v0 = vmul.f32 %v2300_v48, %v330_v36  ;;  %v347_v39 = vmul.f32 %v2300_v48, %v335_v56 }
 0x188   :  { %v343_v1 = vmul.f32 %v2300_v48, %v331_v59  ;;  %v344_v43 = vmul.f32 %v2300_v48, %v332_v60  ;;  %v345_v2 = vmul.f32 %v2300_v48, %v333_v61  ;;  %v346_v49 = vmul.f32 %v2300_v48, %v334_v62 }
 0x189   :  { %v352_v3 = vadd.f32 %v2301_v35, %v340_v37  ;;  %v353_v4 = vadd.f32 %v2301_v35, %v341_v63  ;;  %v354_v5 = vadd.f32 %v2301_v35, %v342_v0  ;;  %v359_v6 = vadd.f32 %v2301_v35, %v347_v39 }
 0x18a   :  { %v355_v7 = vadd.f32 %v2301_v35, %v343_v1  ;;  %v356_v10 = vadd.f32 %v2301_v35, %v344_v43  ;;  %v357_v13 = vadd.f32 %v2301_v35, %v345_v2  ;;  %v358_v14 = vadd.f32 %v2301_v35, %v346_v49 }
 0x18b   :  { %vm361_vm4 = vcmp.ge.f32.partialorder %v352_v3, 0.0  ;;  %vm362_vm5 = vcmp.ge.f32.partialorder %v353_v4, 0.0  ;;  %v370_v15 = vmul.f32 %v369_v50, %v352_v3  ;;  %v371_v16 = vmul.f32 %v369_v50, %v353_v4 }
 0x18c   :  { %vm363_vm6 = vcmp.ge.f32.partialorder %v354_v5, 0.0  ;;  %vm364_vm7 = vcmp.ge.f32.partialorder %v355_v7, 0.0  ;;  %v372_v17 = vmul.f32 %v369_v50, %v354_v5  ;;  %v373_v18 = vmul.f32 %v369_v50, %v355_v7 }
 0x18d   :  { %v378_v19 = vsel %vm361_vm4, %v352_v3, %v370_v15  ;;  %v379_v20 = vsel %vm362_vm5, %v353_v4, %v371_v16  ;;  %vm365_vm8 = vcmp.ge.f32.partialorder %v356_v10, 0.0  ;;  %vm366_vm9 = vcmp.ge.f32.partialorder %v357_v13, 0.0 }
 0x18e   :  { %v386_v21 = vpack.c.bf16 %v379_v20, %v378_v19  ;;  %v380_v22 = vsel %vm363_vm6, %v354_v5, %v372_v17  ;;  %v381_v23 = vsel %vm364_vm7, %v355_v7, %v373_v18  ;;  %v374_v24 = vmul.f32 %v369_v50, %v356_v10 }
 0x18f   :  { %v387_v25 = vpack.c.bf16 %v381_v23, %v380_v22  ;;  %v375_v26 = vmul.f32 %v369_v50, %v357_v13  ;;  %vm367_vm10 = vcmp.ge.f32.partialorder %v358_v14, 0.0  ;;  %vm368_vm11 = vcmp.ge.f32.partialorder %v359_v6, 0.0 }
 0x190   :  { %466 = vmatmul.bf16.vlgmr.msra.gmra.mxu2 %v386_v21  ;;  %v382_v27 = vsel %vm365_vm8, %v356_v10, %v374_v24  ;;  %v376_v28 = vmul.f32 %v369_v50, %v358_v14  ;;  %v377_v29 = vmul.f32 %v369_v50, %v359_v6 }
 0x191   :  { %v383_v30 = vsel %vm366_vm9, %v357_v13, %v375_v26 }
 0x192   :  { %v388_v31 = vpack.c.bf16 %v383_v30, %v382_v27  ;;  %v384_v32 = vsel %vm367_vm10, %v358_v14, %v376_v28  ;;  %v385_v33 = vsel %vm368_vm11, %v359_v6, %v377_v29 }
 0x193   :  { %v389_v34 = vpack.c.bf16 %v385_v33, %v384_v32 }
 0x1a0   :  { %471 = vmatmul.bf16.gmra.mxu2 %v387_v25 }
 0x1b0   :  { %476 = vmatmul.bf16.gmra.mxu2 %v388_v31 }
 0x1c0   :  { %481 = vmatmul.bf16.gmra.mxu2 %v389_v34 }
 0x213   :  { %v467_v38 = vpop.f32.mrf.mxu2 }
 0x214   :  { %v2641_v58 = vadd.f32 %v2302_v41, %v467_v38 }
 0x216   :  { %v511_v59 = vmul.f32 %v2641_v58, %v2641_v58 }
 0x21b   :  { %v469_v40 = vpop.f32.mrf.mxu2 }
 0x21c   :  { %v2653_v62 = vadd.f32 %v2302_v41, %v469_v40 }
 0x21e   :  { %v512_v37 = vmul.f32 %v2653_v62, %v2653_v62 }
 0x223   :  { %v472_v42 = vpop.f32.mrf.mxu2 }
 0x224   :  { %v2618_v44 = vadd.f32 %v2302_v41, %v472_v42 }
 0x226   :  { %491 = vadd.xlane.f32.xlu2 %v2618_v44  ;;  %v513_v61 = vmul.f32 %v2618_v44, %v2618_v44 }
 0x22b   :  { %v474_v45 = vpop.f32.mrf.mxu2 }
 0x22c   :  { %v2621_v46 = vadd.f32 %v2302_v41, %v474_v45 }
 0x22e   :  { %493 = vadd.xlane.f32.xlu0 %v2621_v46  ;;  %v514_v56 = vmul.f32 %v2621_v46, %v2621_v46 }
 0x233   :  { %v477_v47 = vpop.f32.mrf.mxu2 }
 0x234   :  { %v2624_v48 = vadd.f32 %v2302_v41, %v477_v47 }
 0x236   :  { %495 = vadd.xlane.f32.xlu2 %v2624_v48  ;;  %v515_v50 = vmul.f32 %v2624_v48, %v2624_v48 }
 0x238   :  { %527 = vadd.xlane.f32.xlu0 %v515_v50 }
 0x23b   :  { %v479_v51 = vpop.f32.mrf.mxu2 }
 0x23c   :  { %v2629_v52 = vadd.f32 %v2302_v41, %v479_v51 }
 0x23e   :  { %497 = vadd.xlane.f32.xlu2 %v2629_v52  ;;  %v516_v53 = vmul.f32 %v2629_v52, %v2629_v52 }
 0x240   :  { %529 = vadd.xlane.f32.xlu1 %v516_v53 }
 0x243   :  { %v482_v54 = vpop.f32.mrf.mxu2 }
 0x244   :  { %v2634_v55 = vadd.f32 %v2302_v41, %v482_v54 }
 0x246   :  { %499 = vadd.xlane.f32.xlu0 %v2634_v55  ;;  %525 = vadd.xlane.f32.xlu2 %v514_v56  ;;  %v517_v57 = vmul.f32 %v2634_v55, %v2634_v55 }
 0x248   :  { %531 = vadd.xlane.f32.xlu1 %v517_v57 }
 0x24b   :  { %v484_v35 = vpop.f32.mrf.mxu2 }
 0x24c   :  { %v2643_v36 = vadd.f32 %v2302_v41, %v484_v35 }
 0x24e   :  { %501 = vadd.xlane.f32.xlu0 %v2643_v36  ;;  %519 = vadd.xlane.f32.xlu2 %v511_v59  ;;  %v518_v60 = vmul.f32 %v2643_v36, %v2643_v36 }
 0x250   :  { %533 = vadd.xlane.f32.xlu1 %v518_v60 }
 0x256   :  { %487 = vadd.xlane.f32.xlu0 %v2641_v58 }
 0x258   :  { %523 = vadd.xlane.f32.xlu1 %v513_v61 }
 0x25e   :  { %521 = vadd.xlane.f32.xlu0 %v512_v37 }
 0x260   :  { %489 = vadd.xlane.f32.xlu1 %v2653_v62 }
 0x299   :  { %v492_v63 = vpop.xlane.xlu2 %491 }
 0x29a   :  { %v2699_v57 = vmul.f32 0.03125, %v492_v63 }
 0x29c   :  { %v545_v63 = vmul.f32 %v2699_v57, %v2699_v57 }
 0x2a1   :  { %v494_v0 = vpop.xlane.xlu0 %493 }
 0x2a2   :  { %v2668_v15 = vmul.f32 0.03125, %v494_v0 }
 0x2a4   :  { %v546_v20 = vmul.f32 %v2668_v15, %v2668_v15 }
 0x2a9   :  { %v496_v39 = vpop.xlane.xlu2 %495 }
 0x2aa   :  { %v2658_v1 = vmul.f32 0.03125, %v496_v39 }
 0x2ab   :  { %v528_v43 = vpop.xlane.xlu0 %527 }
 0x2ac   :  { %v547_v2 = vmul.f32 %v2658_v1, %v2658_v1  ;;  %v539_v49 = vmul.f32 0.03125, %v528_v43 }
 0x2ae   :  { %v555_v3 = vsub.f32 %v539_v49, %v547_v2 }
 0x2b0   :  { %v563_v4 = vmax.f32 %v555_v3, 0.0 }
 0x2b1   :  { %v498_v5 = vpop.xlane.xlu2 %497 }
 0x2b2   :  { %v2662_v6 = vmul.f32 0.03125, %v498_v5  ;;  %v2664_v10 = vadd.f32 1e-05, %v563_v4 }
 0x2b3   :  { %v530_v7 = vpop.xlane.xlu1 %529 }
 0x2b4   :  { %v548_v13 = vmul.f32 %v2662_v6, %v2662_v6  ;;  %v540_v14 = vmul.f32 0.03125, %v530_v7  ;;  %2319 = vrsqrt.f32 %v2664_v10  ;;  %vm629_vm13 = vweird.f32 %v2664_v10 }
 0x2b6   :  { %v556_v16 = vsub.f32 %v540_v14, %v548_v13 }
 0x2b8   :  { %v564_v17 = vmax.f32 %v556_v16, 0.0 }
 0x2b9   :  { %v500_v18 = vpop.xlane.xlu0 %499  ;;  %v526_v19 = vpop.xlane.xlu2 %525 }
 0x2ba   :  { %v2673_v21 = vmul.f32 0.03125, %v500_v18  ;;  %v538_v22 = vmul.f32 0.03125, %v526_v19  ;;  %v2675_v23 = vadd.f32 1e-05, %v564_v17  ;;  %v2680_v28 = vpop.eup %2319 }
 0x2bb   :  { %v532_v24 = vpop.xlane.xlu1 %531  ;;  %v624_v33 = vmul.f32 %v2680_v28, %v2664_v10  ;;  %vm630_vm12 = vweird.f32 %v2680_v28 }
 0x2bc   :  { %v549_v25 = vmul.f32 %v2673_v21, %v2673_v21  ;;  %v554_v26 = vsub.f32 %v538_v22, %v546_v20  ;;  %v541_v27 = vmul.f32 0.03125, %v532_v24  ;;  %2321 = vrsqrt.f32 %v2675_v23  ;;  %vm2724_vm1 = vmor %vm629_vm13, %vm630_vm12 }
 0x2bd   :  { %v625_v47 = vmul.f32 %v2680_v28, %v624_v33  ;;  %vm639_vm3 = vweird.f32 %v2675_v23 }
 0x2be   :  { %v562_v29 = vmax.f32 %v554_v26, 0.0  ;;  %v557_v30 = vsub.f32 %v541_v27, %v549_v25 }
 0x2bf   :  { %v626_v35 = vmul.f32 0.5, %v625_v47 }
 0x2c0   :  { %v2682_v31 = vadd.f32 1e-05, %v562_v29  ;;  %v565_v32 = vmax.f32 %v557_v30, 0.0 }
 0x2c1   :  { %v502_v34 = vpop.xlane.xlu0 %501  ;;  %v520_v60 = vpop.xlane.xlu2 %519  ;;  %v627_v14 = vsub.f32 1.5, %v626_v35 }
 0x2c2   :  { %2323 = vrsqrt.f32 %v2682_v31  ;;  %v581_v38 = vadd.f32 1e-05, %v565_v32  ;;  %v2687_v40 = vmul.f32 0.03125, %v502_v34  ;;  %v2689_v41 = vpop.eup %2321  ;;  %v535_v5 = vmul.f32 0.03125, %v520_v60 }
 0x2c3   :  { %v534_v42 = vpop.xlane.xlu1 %533  ;;  %v634_v45 = vmul.f32 %v2689_v41, %v2675_v23  ;;  %v628_v26 = vmul.f32 %v2680_v28, %v627_v14  ;;  %vm640_vm15 = vweird.f32 %v2689_v41  ;;  %v571_v34 = vsub.f32 %v2624_v48, %v2658_v1  ;;  %v2787_v14 = vld [vmem:[%s3407_s9] ss:$0 sm:$0xff] }
 0x2c4   :  { %2325 = vrsqrt.f32 %v581_v38  ;;  %v550_v50 = vmul.f32 %v2687_v40, %v2687_v40  ;;  %v542_v51 = vmul.f32 0.03125, %v534_v42  ;;  %vm649_vm2 = vweird.f32 %v581_v38  ;;  %vm2742_vm5 = vmor %vm639_vm3, %vm640_vm15 }
 0x2c5   :  { %v635_v53 = vmul.f32 %v2689_v41, %v634_v45  ;;  %v632_v1 = vsel %vm2724_vm1, %v2680_v28, %v628_v26  ;;  %vm619_vm7 = vweird.f32 %v2682_v31 }
 0x2c6   :  { %v558_v54 = vsub.f32 %v542_v51, %v550_v50  ;;  %v573_v50 = vsub.f32 %v2634_v55, %v2673_v21 }
 0x2c7   :  { %v636_v39 = vmul.f32 0.5, %v635_v53 }
 0x2c8   :  { %v2697_v56 = vpop.eup %2323  ;;  %v566_v61 = vmax.f32 %v558_v54, 0.0 }
 0x2c9   :  { %v614_v59 = vmul.f32 %v2697_v56, %v2682_v31  ;;  %v488_v37 = vpop.xlane.xlu0 %487  ;;  %v637_v17 = vsub.f32 1.5, %v636_v39  ;;  %vm620_vm6 = vweird.f32 %v2697_v56 }
 0x2ca   :  { %v2326_v0 = vpop.eup %2325  ;;  %v2703_v43 = vmul.f32 0.03125, %v488_v37  ;;  %v2706_v3 = vadd.f32 1e-05, %v566_v61  ;;  %vm2770_vm8 = vmor %vm619_vm7, %vm620_vm6 }
 0x2cb   :  { %v615_v2 = vmul.f32 %v2697_v56, %v614_v59  ;;  %v644_v49 = vmul.f32 %v2326_v0, %v581_v38  ;;  %v524_v4 = vpop.xlane.xlu1 %523  ;;  %vm650_vm14 = vweird.f32 %v2326_v0  ;;  %v638_v29 = vmul.f32 %v2689_v41, %v637_v17 }
 0x2cc   :  { %v543_v7 = vmul.f32 %v2703_v43, %v2703_v43  ;;  %v537_v13 = vmul.f32 0.03125, %v524_v4  ;;  %2327 = vrsqrt.f32 %v2706_v3  ;;  %vm2731_vm4 = vmor %vm649_vm2, %vm650_vm14  ;;  %v572_v38 = vsub.f32 %v2629_v52, %v2662_v6 }
 0x2cd   :  { %v645_v16 = vmul.f32 %v2326_v0, %v644_v49  ;;  %v616_v20 = vmul.f32 0.5, %v615_v2  ;;  %v642_v28 = vsel %vm2742_vm5, %v2689_v41, %v638_v29  ;;  %v667_v52 = vmul.f32 %v632_v1, %v571_v34 }
 0x2ce   :  { %v551_v18 = vsub.f32 %v535_v5, %v543_v7  ;;  %v553_v19 = vsub.f32 %v537_v13, %v545_v63  ;;  %v668_v41 = vmul.f32 %v642_v28, %v572_v38  ;;  %v570_v2 = vsub.f32 %v2621_v46, %v2668_v15 }
 0x2cf   :  { %v646_v22 = vmul.f32 0.5, %v645_v16  ;;  %v617_v45 = vsub.f32 1.5, %v616_v20  ;;  %vm659_vm10 = vweird.f32 %v2706_v3 }
 0x2d0   :  { %v559_v24 = vmax.f32 %v551_v18, 0.0  ;;  %v561_v25 = vmax.f32 %v553_v19, 0.0 }
 0x2d1   :  { %v647_v27 = vsub.f32 1.5, %v646_v22  ;;  %v522_v48 = vpop.xlane.xlu0 %521  ;;  %v618_v35 = vmul.f32 %v2697_v56, %v617_v45  ;;  %v704_v45 = vstv %s2774_s26 }
 0x2d2   :  { %v2718_v30 = vadd.f32 1e-05, %v559_v24  ;;  %v2720_v32 = vadd.f32 1e-05, %v561_v25  ;;  %v2328_v33 = vpop.eup %2327  ;;  %v536_v59 = vmul.f32 0.03125, %v522_v48 }
 0x2d3   :  { %v648_v10 = vmul.f32 %v2326_v0, %v647_v27  ;;  %v490_v47 = vpop.xlane.xlu1 %489  ;;  %v654_v53 = vmul.f32 %v2328_v33, %v2706_v3  ;;  %vm660_vm9 = vweird.f32 %v2328_v33  ;;  %v622_v31 = vsel %vm2770_vm8, %v2697_v56, %v618_v35 }
 0x2d4   :  { %2329 = vrsqrt.f32 %v2718_v30  ;;  %v2749_v21 = vmul.f32 0.03125, %v490_v47  ;;  %v574_v56 = vsub.f32 %v2643_v36, %v2687_v40  ;;  %vm661_vm11 = vmor %vm659_vm10, %vm660_vm9  ;;  %v666_v22 = vmul.f32 %v622_v31, %v570_v2 }
 0x2d5   :  { %v652_v55 = vsel %vm2731_vm4, %v2326_v0, %v648_v10  ;;  %2331 = vrsqrt.f32 %v2720_v32  ;;  %v655_v54 = vmul.f32 %v2328_v33, %v654_v53  ;;  %v2763_v0 = vld [vmem:[%s3406_s8] ss:$0 sm:$0xff]  ;;  %v569_v36 = vsub.f32 %v2618_v44, %v2699_v57 }
 0x2d6   :  { %v544_v60 = vmul.f32 %v2749_v21, %v2749_v21  ;;  %v669_v61 = vmul.f32 %v652_v55, %v573_v50  ;;  %v679_v16 = vmul.f32 %v2763_v0, %v667_v52  ;;  %v680_v19 = vmul.f32 %v2763_v0, %v668_v41 }
 0x2d7   :  { %v656_v37 = vmul.f32 0.5, %v655_v54  ;;  %vm589_vm13 = vweird.f32 %v2718_v30  ;;  %v678_v57 = vmul.f32 %v2763_v0, %v666_v22  ;;  %v567_v50 = vsub.f32 %v2641_v58, %v2703_v43 }
 0x2d8   :  { %v552_v6 = vsub.f32 %v536_v59, %v544_v60  ;;  %v681_v13 = vmul.f32 %v2763_v0, %v669_v61  ;;  %v691_v27 = vadd.f32 %v2787_v14, %v679_v16  ;;  %v692_v34 = vadd.f32 %v2787_v14, %v680_v19 }
 0x2d9   :  { %v657_v4 = vsub.f32 1.5, %v656_v37  ;;  %vm609_vm1 = vweird.f32 %v2720_v32 }
 0x2da   :  { %v2766_v39 = vpop.eup %2329  ;;  %v560_v7 = vmax.f32 %v552_v6, 0.0  ;;  %v693_v26 = vadd.f32 %v2787_v14, %v681_v13  ;;  %v709_v1 = vmul.f32 %v704_v45, %v691_v27  ;;  %v710_v23 = vmul.f32 %v704_v45, %v692_v34 }
 0x2db   :  { %v2332_v63 = vpop.eup %2331  ;;  %v584_v5 = vmul.f32 %v2766_v39, %v2718_v30  ;;  %v658_v46 = vmul.f32 %v2328_v33, %v657_v4  ;;  %vm590_vm12 = vweird.f32 %v2766_v39  ;;  %vm701_vm5 = vcmp.ge.f32.partialorder %v692_v34, 0.0 }
 0x2dc   :  { %v604_v15 = vmul.f32 %v2332_v63, %v2720_v32  ;;  %v2793_v18 = vadd.f32 1e-05, %v560_v7  ;;  %vm610_vm14 = vweird.f32 %v2332_v63  ;;  %v711_v44 = vmul.f32 %v704_v45, %v693_v26  ;;  %vm2811_vm15 = vmor %vm589_vm13, %vm590_vm12 }
 0x2dd   :  { %v585_v17 = vmul.f32 %v2766_v39, %v584_v5  ;;  %v662_v3 = vsel %vm661_vm11, %v2328_v33, %v658_v46  ;;  %vm702_vm2 = vcmp.ge.f32.partialorder %v693_v26, 0.0  ;;  %vm611_vm3 = vmor %vm609_vm1, %vm610_vm14  ;;  %v690_v32 = vadd.f32 %v2787_v14, %v678_v57 }
 0x2de   :  { %v605_v20 = vmul.f32 %v2332_v63, %v604_v15  ;;  %2333 = vrsqrt.f32 %v2793_v18  ;;  %v670_v25 = vmul.f32 %v662_v3, %v574_v56  ;;  %v719_v43 = vsel %vm702_vm2, %v693_v26, %v711_v44  ;;  %v2261_v26 = vld [vmem:[%s3400_s2 + $0x40] sm:$0xff] }
 0x2df   :  { %v586_v24 = vmul.f32 0.5, %v585_v17  ;;  %vm700_vm6 = vcmp.ge.f32.partialorder %v691_v27, 0.0  ;;  %v718_v61 = vsel %vm701_vm5, %v692_v34, %v710_v23  ;;  %vm699_vm8 = vcmp.ge.f32.partialorder %v690_v32, 0.0 }
 0x2e0   :  { %v606_v40 = vmul.f32 0.5, %v605_v20  ;;  %v682_v33 = vmul.f32 %v2763_v0, %v670_v25  ;;  %v717_v6 = vsel %vm700_vm6, %v691_v27, %v709_v1  ;;  %vm599_vm10 = vweird.f32 %v2793_v18  ;;  %v2262_v25 = vld [vmem:[%s3400_s2 + $0x48] sm:$0xff] }
 0x2e1   :  { %v587_v29 = vsub.f32 1.5, %v586_v24  ;;  %v723_v49 = vpack.c.bf16 %v718_v61, %v717_v6  ;;  %v568_v5 = vsub.f32 %v2653_v62, %v2749_v21  ;;  %v2268_v21 = vld [vmem:[%s3400_s2 + $0x78] sm:$0xff]  ;;  %v2263_v24 = vld [vmem:[%s3400_s2 + $0x50] sm:$0xff] }
 0x2e2   :  { %v607_v42 = vsub.f32 1.5, %v606_v40  ;;  %v694_v47 = vadd.f32 %v2787_v14, %v682_v33  ;;  %828 = vmatpush.bf16.msrb.mxu0 %v2268_v21 }
 0x2e3   :  { %v588_v10 = vmul.f32 %v2766_v39, %v587_v29 }
 0x2e4   :  { %v608_v53 = vmul.f32 %v2332_v63, %v607_v42  ;;  %v2334_v30 = vpop.eup %2333  ;;  %vm703_vm4 = vcmp.ge.f32.partialorder %v694_v47, 0.0  ;;  %v712_v48 = vmul.f32 %v704_v45, %v694_v47 }
 0x2e5   :  { %v592_v55 = vsel %vm2811_vm15, %v2766_v39, %v588_v10  ;;  %v594_v58 = vmul.f32 %v2334_v30, %v2793_v18  ;;  %v708_v39 = vmul.f32 %v704_v45, %v690_v32  ;;  %vm600_vm7 = vweird.f32 %v2334_v30 }
 0x2e6   :  { %v612_v38 = vsel %vm611_vm3, %v2332_v63, %v608_v53  ;;  %v720_v28 = vsel %vm703_vm4, %v694_v47, %v712_v48  ;;  %v663_v60 = vmul.f32 %v592_v55, %v567_v50  ;;  %vm601_vm11 = vmor %vm599_vm10, %vm600_vm7 }
 0x2e7   :  { %v665_v54 = vmul.f32 %v612_v38, %v569_v36  ;;  %v595_v35 = vmul.f32 %v2334_v30, %v594_v58  ;;  %v724_v59 = vpack.c.bf16 %v720_v28, %v719_v43  ;;  %v716_v13 = vsel %vm699_vm8, %v690_v32, %v708_v39 }
 0x2e8   :  { %v675_v4 = vmul.f32 %v2763_v0, %v663_v60 }
 0x2e9   :  { %v677_v37 = vmul.f32 %v2763_v0, %v665_v54  ;;  %v596_v52 = vmul.f32 0.5, %v595_v35  ;;  %729 = vmatpush.bf16.msrb.mxu3 %v724_v59 }
 0x2ea   :  { %v687_v56 = vadd.f32 %v2787_v14, %v675_v4 }
 0x2eb   :  { %v689_v41 = vadd.f32 %v2787_v14, %v677_v37  ;;  %v597_v2 = vsub.f32 1.5, %v596_v52 }
 0x2ec   :  { %v705_v3 = vmul.f32 %v704_v45, %v687_v56  ;;  %vm696_vm12 = vcmp.ge.f32.partialorder %v687_v56, 0.0 }
 0x2ed   :  { %vm698_vm9 = vcmp.ge.f32.partialorder %v689_v41, 0.0  ;;  %v707_v63 = vmul.f32 %v704_v45, %v689_v41  ;;  %v598_v31 = vmul.f32 %v2334_v30, %v597_v2  ;;  %730 = vmatpush.bf16.msrb.mxu3 %v723_v49  ;;  %v2276_v2 = vld [vmem:[%s3404_s6 + $0x78] sm:$0xff] }
 0x2ee   :  { %v713_v20 = vsel %vm696_vm12, %v687_v56, %v705_v3 }
 0x2ef   :  { %v715_v7 = vsel %vm698_vm9, %v689_v41, %v707_v63  ;;  %v602_v46 = vsel %vm601_vm11, %v2334_v30, %v598_v31  ;;  %v2305_v30 = vld [vmem:[%s3401_s3 + $0x1] ss:$0 sm:$0xff] }
 0x2f0   :  { %v722_v15 = vpack.c.bf16 %v716_v13, %v715_v7  ;;  %v664_v16 = vmul.f32 %v602_v46, %v568_v5  ;;  %v2275_v13 = vld [vmem:[%s3404_s6 + $0x70] sm:$0xff] }
 0x2f2   :  { %731 = vmatpush.bf16.msrb.mxu3 %v722_v15  ;;  %v676_v17 = vmul.f32 %v2763_v0, %v664_v16  ;;  %v2267_v0 = vld [vmem:[%s3400_s2 + $0x70] sm:$0xff] }
 0x2f3   :  { %829 = vmatpush.bf16.msrb.mxu0 %v2267_v0  ;;  %v2273_v0 = vld [vmem:[%s3404_s6 + $0x60] sm:$0xff] }
 0x2f4   :  { %v688_v19 = vadd.f32 %v2787_v14, %v676_v17  ;;  %v2266_v14 = vld [vmem:[%s3400_s2 + $0x68] sm:$0xff] }
 0x2f6   :  { %vm697_vm13 = vcmp.ge.f32.partialorder %v688_v19, 0.0  ;;  %v706_v18 = vmul.f32 %v704_v45, %v688_v19 }
 0x2f7   :  { %830 = vmatpush.bf16.msrb.mxu0 %v2266_v14 }
 0x2f8   :  { %v714_v22 = vsel %vm697_vm13, %v688_v19, %v706_v18  ;;  %v2274_v18 = vld [vmem:[%s3404_s6 + $0x68] sm:$0xff] }
 0x2f9   :  { %v721_v62 = vpack.c.bf16 %v714_v22, %v713_v20 }
 0x2fb   :  { %732 = vmatpush.bf16.msrb.mxu3 %v721_v62 }
 0x2fe   :  { %2021 = vmatmul.msk.bf16.vlgmr.msrb.gmra.mxu3 %vm127_vm0, %v2503_v8  ;;  %v2265_v8 = vld [vmem:[%s3400_s2 + $0x60] sm:$0xff] }
 0x2ff   :  { %831 = vmatpush.bf16.msrb.mxu0 %v2265_v8  ;;  %1049 = vmatpush.bf16.msra.mxu3 %v2276_v2 }
 0x303   :  { %1050 = vmatpush.bf16.msra.mxu3 %v2275_v13 }
 0x307   :  { %1051 = vmatpush.bf16.msra.mxu3 %v2274_v18 }
 0x30b   :  { %1052 = vmatpush.bf16.msra.mxu3 %v2273_v0 }
 0x30e   :  { %2022 = vmatmul.msk.bf16.gmra.mxu3 %vm127_vm0, %v2520_v11  ;;  %v2264_v11 = vld [vmem:[%s3400_s2 + $0x58] sm:$0xff] }
 0x30f   :  { %832 = vmatpush.bf16.msrb.mxu0 %v2264_v11 }
 0x313   :  { %833 = vmatpush.bf16.msrb.mxu0 %v2263_v24 }
 0x317   :  { %834 = vmatpush.bf16.msrb.mxu0 %v2262_v25  ;;  %v2272_v25 = vld [vmem:[%s3404_s6 + $0x58] sm:$0xff] }
 0x318   :  { %1053 = vmatpush.bf16.msra.mxu3 %v2272_v25 }
 0x31b   :  { %835 = vmatpush.bf16.msrb.mxu0 %v2261_v26 }
 0x31e   :  { %2023 = vmatmul.msk.bf16.gmra.mxu3 %vm127_vm0, %v2508_v9 }
 0x32e   :  { %2024 = vmatmul.msk.bf16.gmra.mxu3 %vm127_vm0, %v2525_v12 }
 0x381   :  { %v734_v9 = vpop.f32.mrf.mxu3 }
 0x389   :  { %v736_v36 = vpop.f32.mrf.mxu3 }
 0x38a   :  { %v754_v40 = vpack.c.bf16 %v736_v36, %v734_v9  ;;  %v2271_v36 = vld [vmem:[%s3404_s6 + $0x50] sm:$0xff] }
 0x38b   :  { %1054 = vmatpush.bf16.msra.mxu3 %v2271_v36 }
 0x38c   :  { %836 = vmatmul.bf16.vlgmr.msrb.gmra.mxu0 %v754_v40 }
 0x391   :  { %v739_v12 = vpop.f32.mrf.mxu3 }
 0x399   :  { %v741_v27 = vpop.f32.mrf.mxu3 }
 0x39a   :  { %v755_v29 = vpack.c.bf16 %v741_v27, %v739_v12 }
 0x39c   :  { %841 = vmatmul.bf16.gmra.mxu0 %v755_v29 }
 0x3a1   :  { %v744_v33 = vpop.f32.mrf.mxu3 }
 0x3a9   :  { %v746_v34 = vpop.f32.mrf.mxu3 }
 0x3aa   :  { %v756_v42 = vpack.c.bf16 %v746_v34, %v744_v33  ;;  %v2270_v33 = vld [vmem:[%s3404_s6 + $0x48] sm:$0xff] }
 0x3ab   :  { %1055 = vmatpush.bf16.msra.mxu3 %v2270_v33 }
 0x3ac   :  { %846 = vmatmul.bf16.gmra.mxu0 %v756_v42 }
 0x3b1   :  { %v749_v45 = vpop.f32.mrf.mxu3 }
 0x3b9   :  { %v751_v10 = vpop.f32.mrf.mxu3 }
 0x3ba   :  { %v757_v47 = vpack.c.bf16 %v751_v10, %v749_v45 }
 0x3bc   :  { %851 = vmatmul.bf16.gmra.mxu0 %v757_v47  ;;  %v2269_v47 = vld [vmem:[%s3404_s6 + $0x40] sm:$0xff] }
 0x3bd   :  { %1056 = vmatpush.bf16.msra.mxu3 %v2269_v47 }
 0x409   :  { %v837_v44 = vpop.f32.mrf.mxu0 }
 0x40a   :  { %v2867_v23 = vadd.f32 %v2305_v30, %v837_v44 }
 0x40c   :  { %v871_v43 = vmul.f32 %v2867_v23, %v2867_v23 }
 0x411   :  { %v839_v57 = vpop.f32.mrf.mxu0 }
 0x412   :  { %v2865_v1 = vadd.f32 %v2305_v30, %v839_v57 }
 0x414   :  { %v872_v38 = vmul.f32 %v2865_v1, %v2865_v1  ;;  %v857_v28 = vadd.f32 %v2865_v1, %v2867_v23 }
 0x416   :  { %v879_v59 = vadd.f32 %v872_v38, %v871_v43 }
 0x419   :  { %v842_v50 = vpop.f32.mrf.mxu0 }
 0x41a   :  { %v2869_v55 = vadd.f32 %v2305_v30, %v842_v50 }
 0x41c   :  { %v873_v54 = vmul.f32 %v2869_v55, %v2869_v55  ;;  %v858_v60 = vadd.f32 %v857_v28, %v2869_v55 }
 0x41e   :  { %v880_v52 = vadd.f32 %v879_v59, %v873_v54  ;;  %v958_v59 = vstv %s2076_s21 }
 0x421   :  { %v844_v51 = vpop.f32.mrf.mxu0 }
 0x422   :  { %v2873_v58 = vadd.f32 %v2305_v30, %v844_v51 }
 0x424   :  { %v874_v61 = vmul.f32 %v2873_v58, %v2873_v58  ;;  %v859_v6 = vadd.f32 %v858_v60, %v2873_v58 }
 0x426   :  { %v881_v49 = vadd.f32 %v880_v52, %v874_v61 }
 0x429   :  { %v847_v53 = vpop.f32.mrf.mxu0 }
 0x42a   :  { %v2881_v32 = vadd.f32 %v2305_v30, %v847_v53 }
 0x42c   :  { %v875_v41 = vmul.f32 %v2881_v32, %v2881_v32  ;;  %v860_v4 = vadd.f32 %v859_v6, %v2881_v32 }
 0x42e   :  { %v882_v31 = vadd.f32 %v881_v49, %v875_v41 }
 0x431   :  { %v849_v48 = vpop.f32.mrf.mxu0 }
 0x432   :  { %v2886_v37 = vadd.f32 %v2305_v30, %v849_v48 }
 0x434   :  { %v876_v63 = vmul.f32 %v2886_v37, %v2886_v37  ;;  %v861_v5 = vadd.f32 %v860_v4, %v2886_v37 }
 0x436   :  { %v883_v15 = vadd.f32 %v882_v31, %v876_v63 }
 0x439   :  { %v852_v35 = vpop.f32.mrf.mxu0 }
 0x43a   :  { %v2891_v39 = vadd.f32 %v2305_v30, %v852_v35  ;;  %v2306_v35 = vld [vmem:[%s3402_s4 + $0x1] ss:$0 sm:$0xff] }
 0x43c   :  { %v877_v7 = vmul.f32 %v2891_v39, %v2891_v39  ;;  %v862_v16 = vadd.f32 %v861_v5, %v2891_v39 }
 0x43e   :  { %v884_v17 = vadd.f32 %v883_v15, %v877_v7 }
 0x441   :  { %v854_v46 = vpop.f32.mrf.mxu0 }
 0x442   :  { %v855_v56 = vadd.f32 %v2305_v30, %v854_v46 }
 0x444   :  { %v863_v19 = vadd.f32 %v862_v16, %v855_v56  ;;  %v878_v3 = vmul.f32 %v855_v56, %v855_v56 }
 0x446   :  { %v864_v20 = vrot.slane %v863_v19, 4  ;;  %v885_v22 = vadd.f32 %v884_v17, %v878_v3 }
 0x448   :  { %v865_v62 = vadd.f32 %v864_v20, %v863_v19  ;;  %v886_v21 = vrot.slane %v885_v22, 4 }
 0x44a   :  { %v866_v14 = vrot.slane %v865_v62, 2  ;;  %v887_v8 = vadd.f32 %v886_v21, %v885_v22 }
 0x44c   :  { %v867_v11 = vadd.f32 %v866_v14, %v865_v62  ;;  %v888_v24 = vrot.slane %v887_v8, 2 }
 0x44e   :  { %v868_v26 = vrot.slane %v867_v11, 1  ;;  %v889_v9 = vadd.f32 %v888_v24, %v887_v8 }
 0x450   :  { %v869_v40 = vadd.f32 %v868_v26, %v867_v11  ;;  %v890_v12 = vrot.slane %v889_v9, 1 }
 0x452   :  { %v870_v27 = vmul.f32 0.015625, %v869_v40  ;;  %v891_v29 = vadd.f32 %v890_v12, %v889_v9 }
 0x454   :  { %v892_v34 = vmul.f32 0.015625, %v891_v29  ;;  %v893_v42 = vmul.f32 %v870_v27, %v870_v27  ;;  %v903_v45 = vsub.f32 %v855_v56, %v870_v27  ;;  %v902_v44 = vsub.f32 %v2891_v39, %v870_v27 }
 0x455   :  { %v896_v28 = vsub.f32 %v2867_v23, %v870_v27  ;;  %v897_v54 = vsub.f32 %v2865_v1, %v870_v27  ;;  %v898_v60 = vsub.f32 %v2869_v55, %v870_v27  ;;  %v899_v52 = vsub.f32 %v2873_v58, %v870_v27  ;;  %v2307_v1 = vld [vmem:[%s3403_s5 + $0x1] ss:$0 sm:$0xff] }
 0x456   :  { %v894_v10 = vsub.f32 %v892_v34, %v893_v42  ;;  %v900_v6 = vsub.f32 %v2881_v32, %v870_v27  ;;  %v901_v41 = vsub.f32 %v2886_v37, %v870_v27 }
 0x458   :  { %v895_v57 = vmax.f32 %v894_v10, 0.0 }
 0x45a   :  { %v904_v50 = vadd.f32 1e-05, %v895_v57  ;;  %v2308_v57 = vld [vmem:[%s3405_s7 + $0x1] ss:$0 sm:$0xff] }
 0x45c   :  { %2335 = vrsqrt.f32 %v904_v50  ;;  %vm911_vm15 = vweird.f32 %v904_v50 }
 0x462   :  { %v2336_v51 = vpop.eup %2335 }
 0x463   :  { %v906_v53 = vmul.f32 %v2336_v51, %v904_v50  ;;  %vm912_vm14 = vweird.f32 %v2336_v51 }
 0x464   :  { %vm913_vm1 = vmor %vm911_vm15, %vm912_vm14 }
 0x465   :  { %v907_v30 = vmul.f32 %v2336_v51, %v906_v53 }
 0x467   :  { %v908_v48 = vmul.f32 0.5, %v907_v30 }
 0x469   :  { %v909_v38 = vsub.f32 1.5, %v908_v48 }
 0x46b   :  { %v910_v43 = vmul.f32 %v2336_v51, %v909_v38 }
 0x46d   :  { %v914_v61 = vsel %vm913_vm1, %v2336_v51, %v910_v43 }
 0x46e   :  { %v922_v39 = vmul.f32 %v914_v61, %v903_v45  ;;  %v915_v2 = vmul.f32 %v914_v61, %v896_v28  ;;  %v916_v49 = vmul.f32 %v914_v61, %v897_v54  ;;  %v917_v23 = vmul.f32 %v914_v61, %v898_v60 }
 0x46f   :  { %v918_v4 = vmul.f32 %v914_v61, %v899_v52  ;;  %v919_v63 = vmul.f32 %v914_v61, %v900_v6  ;;  %v920_v31 = vmul.f32 %v914_v61, %v901_v41  ;;  %v921_v5 = vmul.f32 %v914_v61, %v902_v44 }
 0x470   :  { %v928_v55 = vmul.f32 %v2306_v35, %v915_v2  ;;  %v929_v7 = vmul.f32 %v2306_v35, %v916_v49  ;;  %v930_v13 = vmul.f32 %v2306_v35, %v917_v23  ;;  %v935_v58 = vmul.f32 %v2306_v35, %v922_v39 }
 0x471   :  { %v931_v46 = vmul.f32 %v2306_v35, %v918_v4  ;;  %v932_v32 = vmul.f32 %v2306_v35, %v919_v63  ;;  %v933_v15 = vmul.f32 %v2306_v35, %v920_v31  ;;  %v934_v37 = vmul.f32 %v2306_v35, %v921_v5 }
 0x472   :  { %v941_v16 = vadd.f32 %v2307_v1, %v928_v55  ;;  %v942_v56 = vadd.f32 %v2307_v1, %v929_v7  ;;  %v943_v17 = vadd.f32 %v2307_v1, %v930_v13  ;;  %v948_v19 = vadd.f32 %v2307_v1, %v935_v58 }
 0x473   :  { %v944_v3 = vadd.f32 %v2307_v1, %v931_v46  ;;  %v945_v18 = vadd.f32 %v2307_v1, %v932_v32  ;;  %v946_v20 = vadd.f32 %v2307_v1, %v933_v15  ;;  %v947_v22 = vadd.f32 %v2307_v1, %v934_v37 }
 0x474   :  { %vm950_vm2 = vcmp.ge.f32.partialorder %v941_v16, 0.0  ;;  %vm951_vm3 = vcmp.ge.f32.partialorder %v942_v56, 0.0  ;;  %v959_v62 = vmul.f32 %v958_v59, %v941_v16  ;;  %v960_v21 = vmul.f32 %v958_v59, %v942_v56 }
 0x475   :  { %vm952_vm4 = vcmp.ge.f32.partialorder %v943_v17, 0.0  ;;  %vm953_vm5 = vcmp.ge.f32.partialorder %v944_v3, 0.0  ;;  %v961_v0 = vmul.f32 %v958_v59, %v943_v17  ;;  %v962_v14 = vmul.f32 %v958_v59, %v944_v3 }
 0x476   :  { %v967_v8 = vsel %vm950_vm2, %v941_v16, %v959_v62  ;;  %v968_v11 = vsel %vm951_vm3, %v942_v56, %v960_v21  ;;  %vm954_vm6 = vcmp.ge.f32.partialorder %v945_v18, 0.0  ;;  %vm955_vm7 = vcmp.ge.f32.partialorder %v946_v20, 0.0 }
 0x477   :  { %v975_v24 = vpack.c.bf16 %v968_v11, %v967_v8  ;;  %v969_v25 = vsel %vm952_vm4, %v943_v17, %v961_v0  ;;  %v970_v26 = vsel %vm953_vm5, %v944_v3, %v962_v14  ;;  %v963_v9 = vmul.f32 %v958_v59, %v945_v18 }
 0x478   :  { %v976_v36 = vpack.c.bf16 %v970_v26, %v969_v25  ;;  %v964_v40 = vmul.f32 %v958_v59, %v946_v20  ;;  %vm956_vm8 = vcmp.ge.f32.partialorder %v947_v22, 0.0  ;;  %vm957_vm9 = vcmp.ge.f32.partialorder %v948_v19, 0.0 }
 0x479   :  { %1057 = vmatmul.bf16.vlgmr.msra.gmra.mxu3 %v975_v24  ;;  %v971_v12 = vsel %vm954_vm6, %v945_v18, %v963_v9  ;;  %v965_v27 = vmul.f32 %v958_v59, %v947_v22  ;;  %v966_v29 = vmul.f32 %v958_v59, %v948_v19 }
 0x47a   :  { %v972_v33 = vsel %vm955_vm7, %v946_v20, %v964_v40 }
 0x47b   :  { %v977_v34 = vpack.c.bf16 %v972_v33, %v971_v12  ;;  %v973_v42 = vsel %vm956_vm8, %v947_v22, %v965_v27  ;;  %v974_v45 = vsel %vm957_vm9, %v948_v19, %v966_v29 }
 0x47c   :  { %v978_v10 = vpack.c.bf16 %v974_v45, %v973_v42 }
 0x489   :  { %1062 = vmatmul.bf16.gmra.mxu3 %v976_v36 }
 0x499   :  { %1067 = vmatmul.bf16.gmra.mxu3 %v977_v34 }
 0x4a9   :  { %1072 = vmatmul.bf16.gmra.mxu3 %v978_v10 }
 0x4fc   :  { %v1058_v47 = vpop.f32.mrf.mxu3 }
 0x4fd   :  { %v2968_v2 = vadd.f32 %v2308_v57, %v1058_v47 }
 0x4ff   :  { %v1102_v1 = vmul.f32 %v2968_v2, %v2968_v2 }
 0x504   :  { %v1060_v44 = vpop.f32.mrf.mxu3 }
 0x505   :  { %v2975_v23 = vadd.f32 %v2308_v57, %v1060_v44 }
 0x507   :  { %v1103_v4 = vmul.f32 %v2975_v23, %v2975_v23 }
 0x50c   :  { %v1063_v50 = vpop.f32.mrf.mxu3 }
 0x50d   :  { %v2940_v51 = vadd.f32 %v2308_v57, %v1063_v50 }
 0x50f   :  { %1082 = vadd.xlane.f32.xlu0 %v2940_v51  ;;  %v1104_v49 = vmul.f32 %v2940_v51, %v2940_v51 }
 0x514   :  { %v1065_v53 = vpop.f32.mrf.mxu3 }
 0x515   :  { %v2943_v30 = vadd.f32 %v2308_v57, %v1065_v53 }
 0x517   :  { %1084 = vadd.xlane.f32.xlu1 %v2943_v30  ;;  %v1105_v39 = vmul.f32 %v2943_v30, %v2943_v30 }
 0x51c   :  { %v1068_v48 = vpop.f32.mrf.mxu3 }
 0x51d   :  { %v2946_v38 = vadd.f32 %v2308_v57, %v1068_v48 }
 0x51f   :  { %1086 = vadd.xlane.f32.xlu2 %v2946_v38  ;;  %v1106_v43 = vmul.f32 %v2946_v38, %v2946_v38 }
 0x521   :  { %1118 = vadd.xlane.f32.xlu1 %v1106_v43 }
 0x524   :  { %v1070_v28 = vpop.f32.mrf.mxu3 }
 0x525   :  { %v2951_v54 = vadd.f32 %v2308_v57, %v1070_v28 }
 0x527   :  { %1088 = vadd.xlane.f32.xlu0 %v2951_v54  ;;  %v1107_v35 = vmul.f32 %v2951_v54, %v2951_v54 }
 0x529   :  { %1120 = vadd.xlane.f32.xlu2 %v1107_v35 }
 0x52c   :  { %v1073_v59 = vpop.f32.mrf.mxu3 }
 0x52d   :  { %v2956_v60 = vadd.f32 %v2308_v57, %v1073_v59 }
 0x52f   :  { %1090 = vadd.xlane.f32.xlu1 %v2956_v60  ;;  %v1108_v61 = vmul.f32 %v2956_v60, %v2956_v60 }
 0x531   :  { %1122 = vadd.xlane.f32.xlu0 %v1108_v61 }
 0x534   :  { %v1075_v52 = vpop.f32.mrf.mxu3 }
 0x535   :  { %v2961_v6 = vadd.f32 %v2308_v57, %v1075_v52 }
 0x537   :  { %1092 = vadd.xlane.f32.xlu2 %v2961_v6  ;;  %v1109_v41 = vmul.f32 %v2961_v6, %v2961_v6 }
 0x539   :  { %1124 = vadd.xlane.f32.xlu1 %v1109_v41  ;;  %1116 = vadd.xlane.f32.xlu0 %v1105_v39 }
 0x53f   :  { %1114 = vadd.xlane.f32.xlu2 %v1104_v49 }
 0x541   :  { %1078 = vadd.xlane.f32.xlu1 %v2968_v2  ;;  %1110 = vadd.xlane.f32.xlu0 %v1102_v1 }
 0x547   :  { %1080 = vadd.xlane.f32.xlu2 %v2975_v23 }
 0x549   :  { %1112 = vadd.xlane.f32.xlu1 %v1103_v4 }
 0x582   :  { %v1083_v31 = vpop.xlane.xlu0 %1082 }
 0x583   :  { %v3013_v47 = vmul.f32 0.03125, %v1083_v31 }
 0x585   :  { %v1136_v61 = vmul.f32 %v3013_v47, %v3013_v47 }
 0x58a   :  { %v1085_v63 = vpop.xlane.xlu1 %1084 }
 0x58b   :  { %v3003_v36 = vmul.f32 0.03125, %v1085_v63 }
 0x58d   :  { %v1137_v44 = vmul.f32 %v3003_v36, %v3003_v36 }
 0x592   :  { %v1087_v5 = vpop.xlane.xlu2 %1086 }
 0x593   :  { %v2980_v55 = vmul.f32 0.03125, %v1087_v5 }
 0x594   :  { %v1119_v7 = vpop.xlane.xlu1 %1118 }
 0x595   :  { %v1138_v13 = vmul.f32 %v2980_v55, %v2980_v55  ;;  %v1130_v58 = vmul.f32 0.03125, %v1119_v7 }
 0x597   :  { %v1146_v46 = vsub.f32 %v1130_v58, %v1138_v13 }
 0x599   :  { %v1154_v32 = vmax.f32 %v1146_v46, 0.0 }
 0x59a   :  { %v1089_v15 = vpop.xlane.xlu0 %1088 }
 0x59b   :  { %v2984_v37 = vadd.f32 1e-05, %v1154_v32  ;;  %v2986_v16 = vmul.f32 0.03125, %v1089_v15 }
 0x59c   :  { %v1121_v56 = vpop.xlane.xlu2 %1120 }
 0x59d   :  { %2337 = vrsqrt.f32 %v2984_v37  ;;  %v1139_v17 = vmul.f32 %v2986_v16, %v2986_v16  ;;  %v1131_v19 = vmul.f32 0.03125, %v1121_v56  ;;  %vm1220_vm11 = vweird.f32 %v2984_v37 }
 0x59f   :  { %v1147_v3 = vsub.f32 %v1131_v19, %v1139_v17  ;;  %v1162_v19 = vsub.f32 %v2946_v38, %v2980_v55 }
 0x5a1   :  { %v1155_v18 = vmax.f32 %v1147_v3, 0.0 }
 0x5a2   :  { %v1091_v20 = vpop.xlane.xlu1 %1090 }
 0x5a3   :  { %v2991_v22 = vpop.eup %2337  ;;  %v2993_v62 = vmul.f32 0.03125, %v1091_v20  ;;  %v2995_v21 = vadd.f32 1e-05, %v1155_v18 }
 0x5a4   :  { %v1123_v0 = vpop.xlane.xlu0 %1122  ;;  %v1215_v11 = vmul.f32 %v2991_v22, %v2984_v37  ;;  %vm1221_vm10 = vweird.f32 %v2991_v22 }
 0x5a5   :  { %v1140_v14 = vmul.f32 %v2993_v62, %v2993_v62  ;;  %v1132_v8 = vmul.f32 0.03125, %v1123_v0  ;;  %2339 = vrsqrt.f32 %v2995_v21  ;;  %vm3035_vm12 = vmor %vm1220_vm11, %vm1221_vm10  ;;  %vm1230_vm1 = vweird.f32 %v2995_v21 }
 0x5a6   :  { %v1216_v26 = vmul.f32 %v2991_v22, %v1215_v11 }
 0x5a7   :  { %v1148_v24 = vsub.f32 %v1132_v8, %v1140_v14 }
 0x5a8   :  { %v1217_v42 = vmul.f32 0.5, %v1216_v26 }
 0x5a9   :  { %v1156_v25 = vmax.f32 %v1148_v24, 0.0 }
 0x5aa   :  { %v1093_v9 = vpop.xlane.xlu2 %1092  ;;  %v1218_v43 = vsub.f32 1.5, %v1217_v42 }
 0x5ab   :  { %v1172_v40 = vadd.f32 1e-05, %v1156_v25  ;;  %v3005_v12 = vmul.f32 0.03125, %v1093_v9  ;;  %v3007_v27 = vpop.eup %2339 }
 0x5ac   :  { %v1125_v29 = vpop.xlane.xlu1 %1124  ;;  %v1117_v33 = vpop.xlane.xlu0 %1116  ;;  %v1225_v34 = vmul.f32 %v3007_v27, %v2995_v21  ;;  %v1219_v13 = vmul.f32 %v2991_v22, %v1218_v43  ;;  %vm1231_vm14 = vweird.f32 %v3007_v27  ;;  %v1161_v43 = vsub.f32 %v2943_v30, %v3003_v36 }
 0x5ad   :  { %2341 = vrsqrt.f32 %v1172_v40  ;;  %v1141_v45 = vmul.f32 %v3005_v12, %v3005_v12  ;;  %v1133_v10 = vmul.f32 0.03125, %v1125_v29  ;;  %v1129_v50 = vmul.f32 0.03125, %v1117_v33  ;;  %v3063_v33 = vld [vmem:[%s3406_s8 + $0x1] ss:$0 sm:$0xff]  ;;  %vm3067_vm3 = vmor %vm1230_vm1, %vm1231_vm14 }
 0x5ae   :  { %v1226_v57 = vmul.f32 %v3007_v27, %v1225_v34  ;;  %v1223_v20 = vsel %vm3035_vm12, %v2991_v22, %v1219_v13  ;;  %vm1240_vm15 = vweird.f32 %v1172_v40  ;;  %v1164_v34 = vsub.f32 %v2956_v60, %v2993_v62 }
 0x5af   :  { %v1149_v53 = vsub.f32 %v1133_v10, %v1141_v45  ;;  %v1145_v48 = vsub.f32 %v1129_v50, %v1137_v44 }
 0x5b0   :  { %v1227_v52 = vmul.f32 0.5, %v1226_v57 }
 0x5b1   :  { %v1157_v28 = vmax.f32 %v1149_v53, 0.0  ;;  %v1153_v41 = vmax.f32 %v1145_v48, 0.0  ;;  %v1163_v53 = vsub.f32 %v2951_v54, %v2986_v16  ;;  %v3094_v16 = vstv %s3044_s28 }
 0x5b2   :  { %v1115_v35 = vpop.xlane.xlu2 %1114  ;;  %v1228_v46 = vsub.f32 1.5, %v1227_v52 }
 0x5b3   :  { %v2342_v59 = vpop.eup %2341  ;;  %v1128_v39 = vmul.f32 0.03125, %v1115_v35  ;;  %v3020_v1 = vadd.f32 1e-05, %v1157_v28  ;;  %v3022_v63 = vadd.f32 1e-05, %v1153_v41  ;;  %v1165_v41 = vsub.f32 %v2961_v6, %v3005_v12 }
 0x5b4   :  { %v1235_v49 = vmul.f32 %v2342_v59, %v1172_v40  ;;  %v1079_v4 = vpop.xlane.xlu1 %1078  ;;  %v1111_v7 = vpop.xlane.xlu0 %1110  ;;  %vm1241_vm13 = vweird.f32 %v2342_v59  ;;  %v1229_v8 = vmul.f32 %v3007_v27, %v1228_v46  ;;  %v1258_v40 = vmul.f32 %v1223_v20, %v1162_v19 }
 0x5b5   :  { %v1144_v31 = vsub.f32 %v1128_v39, %v1136_v61  ;;  %v3024_v5 = vmul.f32 0.03125, %v1079_v4  ;;  %2343 = vrsqrt.f32 %v3020_v1  ;;  %v1126_v17 = vmul.f32 0.03125, %v1111_v7  ;;  %vm3053_vm2 = vmor %vm1240_vm15, %vm1241_vm13 }
 0x5b6   :  { %v1236_v58 = vmul.f32 %v2342_v59, %v1235_v49  ;;  %2345 = vrsqrt.f32 %v3022_v63  ;;  %v1233_v44 = vsel %vm3067_vm3, %v3007_v27, %v1229_v8  ;;  %v1271_v27 = vmul.f32 %v3063_v33, %v1258_v40 }
 0x5b7   :  { %v1152_v32 = vmax.f32 %v1144_v31, 0.0  ;;  %v1134_v56 = vmul.f32 %v3024_v5, %v3024_v5  ;;  %v1259_v52 = vmul.f32 %v1233_v44, %v1163_v53  ;;  %vm1250_vm6 = vweird.f32 %v3020_v1 }
 0x5b8   :  { %v1237_v15 = vmul.f32 0.5, %v1236_v58  ;;  %vm1210_vm8 = vweird.f32 %v3022_v63  ;;  %v1158_v8 = vsub.f32 %v2968_v2, %v3024_v5 }
 0x5b9   :  { %v3039_v18 = vadd.f32 1e-05, %v1152_v32  ;;  %v1142_v37 = vsub.f32 %v1126_v17, %v1134_v56  ;;  %v1272_v12 = vmul.f32 %v3063_v33, %v1259_v52 }
 0x5ba   :  { %v1238_v0 = vsub.f32 1.5, %v1237_v15  ;;  %v1081_v14 = vpop.xlane.xlu2 %1080 }
 0x5bb   :  { %2347 = vrsqrt.f32 %v3039_v18  ;;  %v3049_v38 = vmul.f32 0.03125, %v1081_v14  ;;  %v2344_v55 = vpop.eup %2343  ;;  %v1150_v24 = vmax.f32 %v1142_v37, 0.0  ;;  %vm1200_vm11 = vweird.f32 %v3039_v18 }
 0x5bc   :  { %v1239_v11 = vmul.f32 %v2342_v59, %v1238_v0  ;;  %v1113_v25 = vpop.xlane.xlu1 %1112  ;;  %v2346_v22 = vpop.eup %2345  ;;  %v1245_v9 = vmul.f32 %v2344_v55, %v3020_v1  ;;  %vm1251_vm4 = vweird.f32 %v2344_v55  ;;  %v1160_v14 = vsub.f32 %v2940_v51, %v3013_v47 }
 0x5bd   :  { %v1135_v29 = vmul.f32 %v3049_v38, %v3049_v38  ;;  %v1205_v45 = vmul.f32 %v2346_v22, %v3022_v63  ;;  %v3076_v10 = vadd.f32 1e-05, %v1150_v24  ;;  %v1127_v50 = vmul.f32 0.03125, %v1113_v25  ;;  %vm1252_vm7 = vmor %vm1250_vm6, %vm1251_vm4 }
 0x5be   :  { %v1243_v42 = vsel %vm3053_vm2, %v2342_v59, %v1239_v11  ;;  %v1246_v57 = vmul.f32 %v2344_v55, %v1245_v9  ;;  %v3089_v59 = vld [vmem:[%s3407_s9 + $0x1] ss:$0 sm:$0xff]  ;;  %vm1211_vm5 = vweird.f32 %v2346_v22  ;;  %v1159_v52 = vsub.f32 %v2975_v23, %v3049_v38 }
 0x5bf   :  { %v1206_v48 = vmul.f32 %v2346_v22, %v1205_v45  ;;  %2349 = vrsqrt.f32 %v3076_v10  ;;  %v1260_v60 = vmul.f32 %v1243_v42, %v1164_v34  ;;  %v1143_v35 = vsub.f32 %v1127_v50, %v1135_v29  ;;  %vm1212_vm9 = vmor %vm1210_vm8, %vm1211_vm5 }
 0x5c0   :  { %v1247_v28 = vmul.f32 0.5, %v1246_v57  ;;  %v1284_v13 = vadd.f32 %v3089_v59, %v1271_v27  ;;  %v1285_v37 = vadd.f32 %v3089_v59, %v1272_v12  ;;  %vm1180_vm1 = vweird.f32 %v3076_v10  ;;  %v2281_v12 = vld [vmem:[%s3400_s2 + $0xa0] sm:$0xff] }
 0x5c1   :  { %v2348_v62 = vpop.eup %2347  ;;  %v1207_v61 = vmul.f32 0.5, %v1206_v48  ;;  %v1151_v30 = vmax.f32 %v1143_v35, 0.0  ;;  %v1273_v4 = vmul.f32 %v3063_v33, %v1260_v60 }
 0x5c2   :  { %v1195_v54 = vmul.f32 %v2348_v62, %v3039_v18  ;;  %v1248_v39 = vsub.f32 1.5, %v1247_v28  ;;  %vm1201_vm10 = vweird.f32 %v2348_v62  ;;  %v1302_v11 = vmul.f32 %v3094_v16, %v1284_v13 }
 0x5c3   :  { %v1208_v36 = vsub.f32 1.5, %v1207_v61  ;;  %v3100_v7 = vadd.f32 1e-05, %v1151_v30  ;;  %v1286_v19 = vadd.f32 %v3089_v59, %v1273_v4  ;;  %vm1202_vm12 = vmor %vm1200_vm11, %vm1201_vm10  ;;  %v1303_v47 = vmul.f32 %v3094_v16, %v1285_v37 }
 0x5c4   :  { %v1196_v49 = vmul.f32 %v2348_v62, %v1195_v54  ;;  %v1249_v31 = vmul.f32 %v2344_v55, %v1248_v39  ;;  %vm1294_vm2 = vcmp.ge.f32.partialorder %v1285_v37, 0.0  ;;  %vm1293_vm4 = vcmp.ge.f32.partialorder %v1284_v13, 0.0 }
 0x5c5   :  { %v2350_v58 = vpop.eup %2349  ;;  %v1209_v46 = vmul.f32 %v2346_v22, %v1208_v36  ;;  %2351 = vrsqrt.f32 %v3100_v7  ;;  %vm1295_vm14 = vcmp.ge.f32.partialorder %v1286_v19, 0.0  ;;  %v1311_v48 = vsel %vm1294_vm2, %v1285_v37, %v1303_v47 }
 0x5c6   :  { %v1197_v6 = vmul.f32 0.5, %v1196_v49  ;;  %v1253_v32 = vsel %vm1252_vm7, %v2344_v55, %v1249_v31  ;;  %v1175_v15 = vmul.f32 %v2350_v58, %v3076_v10  ;;  %vm1181_vm13 = vweird.f32 %v2350_v58 }
 0x5c7   :  { %v1213_v1 = vsel %vm1212_vm9, %v2346_v22, %v1209_v46  ;;  %v1261_v17 = vmul.f32 %v1253_v32, %v1165_v41  ;;  %v1304_v22 = vmul.f32 %v3094_v16, %v1286_v19  ;;  %vm1182_vm3 = vmor %vm1180_vm1, %vm1181_vm13  ;;  %vm1190_vm8 = vweird.f32 %v3100_v7  ;;  %v2371_v46 = vld [vmem:[%s3398_s0] sm:$0xff]  ;;  %v2280_v32 = vld [vmem:[%s3400_s2 + $0x98] sm:$0xff] }
 0x5c8   :  { %v1198_v56 = vsub.f32 1.5, %v1197_v6  ;;  %v1176_v3 = vmul.f32 %v2350_v58, %v1175_v15  ;;  %v1257_v20 = vmul.f32 %v1213_v1, %v1161_v43  ;;  %v1310_v43 = vsel %vm1293_vm4, %v1284_v13, %v1302_v11  ;;  %v2282_v6 = vld [vmem:[%s3400_s2 + $0xa8] sm:$0xff]  ;;  %v2373_v15 = vld [vmem:[%s3398_s0 + $0x10] sm:$0xff]  ;;  %v2374_v1 = vld [vmem:[%s3398_s0 + $0x18] sm:$0xff] }
 0x5c9   :  { %v1274_v63 = vmul.f32 %v3063_v33, %v1261_v17  ;;  %v1312_v34 = vsel %vm1295_vm14, %v1286_v19, %v1304_v22  ;;  %v1316_v35 = vpack.c.bf16 %v1311_v48, %v1310_v43  ;;  %v2278_v17 = vld [vmem:[%s3400_s2 + $0x88] sm:$0xff]  ;;  %v2277_v19 = vld [vmem:[%s3400_s2 + $0x80] sm:$0xff]  ;;  %v2292_v43 = vld [vmem:[%s3404_s6 + $0xb8] sm:$0xff] }
 0x5ca   :  { %v1199_v0 = vmul.f32 %v2348_v62, %v1198_v56  ;;  %v1177_v55 = vmul.f32 0.5, %v1176_v3  ;;  %v1270_v18 = vmul.f32 %v3063_v33, %v1257_v20  ;;  %v2279_v56 = vld [vmem:[%s3400_s2 + $0x90] sm:$0xff]  ;;  %1642 = vmatpush.bf16.msra.mxu0 %v2292_v43 }
 0x5cb   :  { %v1287_v25 = vadd.f32 %v3089_v59, %v1274_v63  ;;  %v2352_v26 = vpop.eup %2351 }
 0x5cc   :  { %v1203_v24 = vsel %vm1202_vm12, %v2348_v62, %v1199_v0  ;;  %v1178_v9 = vsub.f32 1.5, %v1177_v55  ;;  %v1185_v51 = vmul.f32 %v2352_v26, %v3100_v7  ;;  %v1283_v45 = vadd.f32 %v3089_v59, %v1270_v18 }
 0x5cd   :  { %v1256_v29 = vmul.f32 %v1203_v24, %v1160_v14  ;;  %vm1296_vm15 = vcmp.ge.f32.partialorder %v1287_v25, 0.0  ;;  %v1305_v2 = vmul.f32 %v3094_v16, %v1287_v25  ;;  %vm1191_vm6 = vweird.f32 %v2352_v26 }
 0x5ce   :  { %v1179_v5 = vmul.f32 %v2350_v58, %v1178_v9  ;;  %v1186_v21 = vmul.f32 %v2352_v26, %v1185_v51  ;;  %v1301_v28 = vmul.f32 %v3094_v16, %v1283_v45  ;;  %vm1292_vm7 = vcmp.ge.f32.partialorder %v1283_v45, 0.0  ;;  %vm1192_vm9 = vmor %vm1190_vm8, %vm1191_vm6 }
 0x5cf   :  { %v1269_v40 = vmul.f32 %v3063_v33, %v1256_v29  ;;  %v1313_v42 = vsel %vm1296_vm15, %v1287_v25, %v1305_v2  ;;  %v2311_v2 = vld [vmem:[%s3401_s3 + $0x2] ss:$0 sm:$0xff] }
 0x5d0   :  { %v1183_v44 = vsel %vm1182_vm3, %v2350_v58, %v1179_v5  ;;  %v1317_v57 = vpack.c.bf16 %v1313_v42, %v1312_v34  ;;  %v1187_v53 = vmul.f32 0.5, %v1186_v21  ;;  %v1309_v39 = vsel %vm1292_vm7, %v1283_v45, %v1301_v28 }
 0x5d1   :  { %v1282_v50 = vadd.f32 %v3089_v59, %v1269_v40  ;;  %v1254_v60 = vmul.f32 %v1183_v44, %v1158_v8 }
 0x5d2   :  { %1322 = vmatpush.bf16.msrb.mxu1 %v1317_v57  ;;  %v1188_v62 = vsub.f32 1.5, %v1187_v53 }
 0x5d3   :  { %vm1291_vm5 = vcmp.ge.f32.partialorder %v1282_v50, 0.0  ;;  %v1300_v10 = vmul.f32 %v3094_v16, %v1282_v50  ;;  %v1267_v27 = vmul.f32 %v3063_v33, %v1254_v60 }
 0x5d4   :  { %v1189_v61 = vmul.f32 %v2352_v26, %v1188_v62 }
 0x5d5   :  { %v1308_v54 = vsel %vm1291_vm5, %v1282_v50, %v1300_v10  ;;  %v1280_v49 = vadd.f32 %v3089_v59, %v1267_v27 }
 0x5d6   :  { %1323 = vmatpush.bf16.msrb.mxu1 %v1316_v35  ;;  %v1193_v41 = vsel %vm1192_vm9, %v2352_v26, %v1189_v61  ;;  %v1315_v30 = vpack.c.bf16 %v1309_v39, %v1308_v54  ;;  %v2291_v39 = vld [vmem:[%s3404_s6 + $0xb0] sm:$0xff] }
 0x5d7   :  { %v1255_v36 = vmul.f32 %v1193_v41, %v1159_v52  ;;  %v1298_v13 = vmul.f32 %v3094_v16, %v1280_v49  ;;  %vm1289_vm10 = vcmp.ge.f32.partialorder %v1280_v49, 0.0  ;;  %1643 = vmatpush.bf16.msra.mxu0 %v2291_v39 }
 0x5d9   :  { %v1268_v4 = vmul.f32 %v3063_v33, %v1255_v36  ;;  %v1306_v23 = vsel %vm1289_vm10, %v1280_v49, %v1298_v13  ;;  %v2372_v33 = vld [vmem:[%s3398_s0 + $0x8] sm:$0xff] }
 0x5da   :  { %1324 = vmatpush.bf16.msrb.mxu1 %v1315_v30 }
 0x5db   :  { %v1281_v31 = vadd.f32 %v3089_v59, %v1268_v4  ;;  %v2284_v59 = vld [vmem:[%s3400_s2 + $0xb8] sm:$0xff] }
 0x5dc   :  { %1421 = vmatpush.bf16.msrb.mxu2 %v2284_v59 }
 0x5dd   :  { %vm1290_vm11 = vcmp.ge.f32.partialorder %v1281_v31, 0.0  ;;  %v1299_v7 = vmul.f32 %v3094_v16, %v1281_v31  ;;  %v2283_v16 = vld [vmem:[%s3400_s2 + $0xb0] sm:$0xff] }
 0x5df   :  { %v1307_v38 = vsel %vm1290_vm11, %v1281_v31, %v1299_v7 }
 0x5e0   :  { %v1314_v58 = vpack.c.bf16 %v1307_v38, %v1306_v23  ;;  %1422 = vmatpush.bf16.msrb.mxu2 %v2283_v16  ;;  %v2290_v23 = vld [vmem:[%s3404_s6 + $0xa8] sm:$0xff]  ;;  %v2289_v16 = vld [vmem:[%s3404_s6 + $0xa0] sm:$0xff] }
 0x5e1   :  { %1644 = vmatpush.bf16.msra.mxu0 %v2290_v23 }
 0x5e2   :  { %1325 = vmatpush.bf16.msrb.mxu1 %v1314_v58 }
 0x5e4   :  { %1423 = vmatpush.bf16.msrb.mxu2 %v2282_v6 }
 0x5e5   :  { %2129 = vmatmul.msk.bf16.vlgmr.msrb.gmra.mxu1 %vm127_vm0, %v2371_v46  ;;  %1645 = vmatpush.bf16.msra.mxu0 %v2289_v16 }
 0x5e8   :  { %1424 = vmatpush.bf16.msrb.mxu2 %v2281_v12 }
 0x5ec   :  { %1425 = vmatpush.bf16.msrb.mxu2 %v2280_v32 }
 0x5f0   :  { %1426 = vmatpush.bf16.msrb.mxu2 %v2279_v56 }
 0x5f4   :  { %1427 = vmatpush.bf16.msrb.mxu2 %v2278_v17 }
 0x5f5   :  { %2130 = vmatmul.msk.bf16.gmra.mxu1 %vm127_vm0, %v2372_v33 }
 0x5f8   :  { %1428 = vmatpush.bf16.msrb.mxu2 %v2277_v19 }
 0x605   :  { %2131 = vmatmul.msk.bf16.gmra.mxu1 %vm127_vm0, %v2373_v15 }
 0x615   :  { %2132 = vmatmul.msk.bf16.gmra.mxu1 %vm127_vm0, %v2374_v1  ;;  %v2288_v1 = vld [vmem:[%s3404_s6 + $0x98] sm:$0xff] }
 0x616   :  { %1646 = vmatpush.bf16.msra.mxu0 %v2288_v1 }
 0x662   :  { %v1327_v3 = vpop.f32.mrf.mxu1 }
 0x66a   :  { %v1329_v20 = vpop.f32.mrf.mxu1 }
 0x66b   :  { %v1347_v0 = vpack.c.bf16 %v1329_v20, %v1327_v3  ;;  %v2287_v20 = vld [vmem:[%s3404_s6 + $0x90] sm:$0xff] }
 0x66c   :  { %1647 = vmatpush.bf16.msra.mxu0 %v2287_v20 }
 0x66d   :  { %1429 = vmatmul.bf16.vlgmr.msrb.gmra.mxu2 %v1347_v0 }
 0x672   :  { %v1332_v63 = vpop.f32.mrf.mxu1 }
 0x67a   :  { %v1334_v37 = vpop.f32.mrf.mxu1 }
 0x67b   :  { %v1348_v14 = vpack.c.bf16 %v1334_v37, %v1332_v63  ;;  %v2286_v37 = vld [vmem:[%s3404_s6 + $0x88] sm:$0xff] }
 0x67c   :  { %1648 = vmatpush.bf16.msra.mxu0 %v2286_v37 }
 0x67d   :  { %1434 = vmatmul.bf16.gmra.mxu2 %v1348_v14 }
 0x682   :  { %v1337_v8 = vpop.f32.mrf.mxu1 }
 0x68a   :  { %v1339_v55 = vpop.f32.mrf.mxu1 }
 0x68b   :  { %v1349_v11 = vpack.c.bf16 %v1339_v55, %v1337_v8 }
 0x68d   :  { %1439 = vmatmul.bf16.gmra.mxu2 %v1349_v11 }
 0x692   :  { %v1342_v24 = vpop.f32.mrf.mxu1 }
 0x69a   :  { %v1344_v25 = vpop.f32.mrf.mxu1 }
 0x69b   :  { %v1350_v22 = vpack.c.bf16 %v1344_v25, %v1342_v24  ;;  %v2285_v25 = vld [vmem:[%s3404_s6 + $0x80] sm:$0xff] }
 0x69c   :  { %1649 = vmatpush.bf16.msra.mxu0 %v2285_v25 }
 0x69d   :  { %1444 = vmatmul.bf16.gmra.mxu2 %v1350_v22 }
 0x6f0   :  { %v1430_v18 = vpop.f32.mrf.mxu2 }
 0x6f1   :  { %v3182_v40 = vadd.f32 %v2311_v2, %v1430_v18 }
 0x6f3   :  { %v1464_v45 = vmul.f32 %v3182_v40, %v3182_v40 }
 0x6f8   :  { %v1432_v26 = vpop.f32.mrf.mxu2 }
 0x6f9   :  { %v3180_v5 = vadd.f32 %v2311_v2, %v1432_v26 }
 0x6fb   :  { %v1465_v34 = vmul.f32 %v3180_v5, %v3180_v5  ;;  %v1450_v44 = vadd.f32 %v3180_v5, %v3182_v40 }
 0x6fd   :  { %v1472_v48 = vadd.f32 %v1465_v34, %v1464_v45 }
 0x700   :  { %v1435_v9 = vpop.f32.mrf.mxu2 }
 0x701   :  { %v3184_v21 = vadd.f32 %v2311_v2, %v1435_v9 }
 0x703   :  { %v1466_v57 = vmul.f32 %v3184_v21, %v3184_v21  ;;  %v1451_v60 = vadd.f32 %v1450_v44, %v3184_v21 }
 0x705   :  { %v1473_v28 = vadd.f32 %v1472_v48, %v1466_v57  ;;  %v1551_v48 = vstv %s2184_s29 }
 0x708   :  { %v1437_v29 = vpop.f32.mrf.mxu2 }
 0x709   :  { %v3188_v42 = vadd.f32 %v2311_v2, %v1437_v29 }
 0x70b   :  { %v1467_v10 = vmul.f32 %v3188_v42, %v3188_v42  ;;  %v1452_v35 = vadd.f32 %v1451_v60, %v3188_v42 }
 0x70d   :  { %v1474_v54 = vadd.f32 %v1473_v28, %v1467_v10 }
 0x710   :  { %v1440_v51 = vpop.f32.mrf.mxu2 }
 0x711   :  { %v3196_v50 = vadd.f32 %v2311_v2, %v1440_v51 }
 0x713   :  { %v1468_v27 = vmul.f32 %v3196_v50, %v3196_v50  ;;  %v1453_v52 = vadd.f32 %v1452_v35, %v3196_v50 }
 0x715   :  { %v1475_v30 = vadd.f32 %v1474_v54, %v1468_v27 }
 0x718   :  { %v1442_v47 = vpop.f32.mrf.mxu2 }
 0x719   :  { %v3201_v62 = vadd.f32 %v2311_v2, %v1442_v47 }
 0x71b   :  { %v1469_v41 = vmul.f32 %v3201_v62, %v3201_v62  ;;  %v1454_v36 = vadd.f32 %v1453_v52, %v3201_v62 }
 0x71d   :  { %v1476_v31 = vadd.f32 %v1475_v30, %v1469_v41 }
 0x720   :  { %v1445_v53 = vpop.f32.mrf.mxu2 }
 0x721   :  { %v3209_v61 = vadd.f32 %v2311_v2, %v1445_v53  ;;  %v2312_v53 = vld [vmem:[%s3402_s4 + $0x2] ss:$0 sm:$0xff] }
 0x723   :  { %v1470_v49 = vmul.f32 %v3209_v61, %v3209_v61  ;;  %v1455_v13 = vadd.f32 %v1454_v36, %v3209_v61 }
 0x725   :  { %v1477_v38 = vadd.f32 %v1476_v31, %v1470_v49 }
 0x728   :  { %v1447_v4 = vpop.f32.mrf.mxu2 }
 0x729   :  { %v1448_v7 = vadd.f32 %v2311_v2, %v1447_v4 }
 0x72b   :  { %v1456_v58 = vadd.f32 %v1455_v13, %v1448_v7  ;;  %v1471_v46 = vmul.f32 %v1448_v7, %v1448_v7 }
 0x72d   :  { %v1457_v33 = vrot.slane %v1456_v58, 4  ;;  %v1478_v59 = vadd.f32 %v1477_v38, %v1471_v46 }
 0x72f   :  { %v1458_v6 = vadd.f32 %v1457_v33, %v1456_v58  ;;  %v1479_v12 = vrot.slane %v1478_v59, 4 }
 0x731   :  { %v1459_v32 = vrot.slane %v1458_v6, 2  ;;  %v1480_v15 = vadd.f32 %v1479_v12, %v1478_v59 }
 0x733   :  { %v1460_v56 = vadd.f32 %v1459_v32, %v1458_v6  ;;  %v1481_v17 = vrot.slane %v1480_v15, 2 }
 0x735   :  { %v1461_v19 = vrot.slane %v1460_v56, 1  ;;  %v1482_v3 = vadd.f32 %v1481_v17, %v1480_v15 }
 0x737   :  { %v1462_v0 = vadd.f32 %v1461_v19, %v1460_v56  ;;  %v1483_v63 = vrot.slane %v1482_v3, 1 }
 0x739   :  { %v1463_v14 = vmul.f32 0.015625, %v1462_v0  ;;  %v1484_v8 = vadd.f32 %v1483_v63, %v1482_v3 }
 0x73b   :  { %v1485_v55 = vmul.f32 0.015625, %v1484_v8  ;;  %v1486_v11 = vmul.f32 %v1463_v14, %v1463_v14  ;;  %v1496_v24 = vsub.f32 %v1448_v7, %v1463_v14  ;;  %v1495_v18 = vsub.f32 %v3209_v61, %v1463_v14 }
 0x73c   :  { %v1489_v44 = vsub.f32 %v3182_v40, %v1463_v14  ;;  %v1490_v57 = vsub.f32 %v3180_v5, %v1463_v14  ;;  %v1491_v60 = vsub.f32 %v3184_v21, %v1463_v14  ;;  %v1492_v43 = vsub.f32 %v3188_v42, %v1463_v14  ;;  %v2313_v5 = vld [vmem:[%s3403_s5 + $0x2] ss:$0 sm:$0xff] }
 0x73d   :  { %v1487_v22 = vsub.f32 %v1485_v55, %v1486_v11  ;;  %v1493_v28 = vsub.f32 %v3196_v50, %v1463_v14  ;;  %v1494_v35 = vsub.f32 %v3201_v62, %v1463_v14 }
 0x73f   :  { %v1488_v26 = vmax.f32 %v1487_v22, 0.0  ;;  %v2314_v22 = vld [vmem:[%s3405_s7 + $0x2] ss:$0 sm:$0xff]  ;;  %s2236_s7 = sld [smem:[#allocation4 + $0x2]] }
 0x741   :  { %v1497_v9 = vadd.f32 1e-05, %v1488_v26 }
 0x743   :  { %2353 = vrsqrt.f32 %v1497_v9  ;;  %vm1504_vm12 = vweird.f32 %v1497_v9 }
 0x749   :  { %v2354_v29 = vpop.eup %2353 }
 0x74a   :  { %v1499_v51 = vmul.f32 %v2354_v29, %v1497_v9  ;;  %vm1505_vm0 = vweird.f32 %v2354_v29 }
 0x74b   :  { %vm1506_vm13 = vmor %vm1504_vm12, %vm1505_vm0 }
 0x74c   :  { %v1500_v2 = vmul.f32 %v2354_v29, %v1499_v51 }
 0x74e   :  { %v1501_v47 = vmul.f32 0.5, %v1500_v2 }
 0x750   :  { %v1502_v34 = vsub.f32 1.5, %v1501_v47 }
 0x752   :  { %v1503_v45 = vmul.f32 %v2354_v29, %v1502_v34 }
 0x754   :  { %v1507_v10 = vsel %vm1506_vm13, %v2354_v29, %v1503_v45 }
 0x755   :  { %v1515_v27 = vmul.f32 %v1507_v10, %v1496_v24  ;;  %v1508_v61 = vmul.f32 %v1507_v10, %v1489_v44  ;;  %v1509_v54 = vmul.f32 %v1507_v10, %v1490_v57  ;;  %v1510_v40 = vmul.f32 %v1507_v10, %v1491_v60 }
 0x756   :  { %v1511_v52 = vmul.f32 %v1507_v10, %v1492_v43  ;;  %v1512_v41 = vmul.f32 %v1507_v10, %v1493_v28  ;;  %v1513_v39 = vmul.f32 %v1507_v10, %v1494_v35  ;;  %v1514_v30 = vmul.f32 %v1507_v10, %v1495_v18 }
 0x757   :  { %v1521_v21 = vmul.f32 %v2312_v53, %v1508_v61  ;;  %v1522_v36 = vmul.f32 %v2312_v53, %v1509_v54  ;;  %v1523_v49 = vmul.f32 %v2312_v53, %v1510_v40  ;;  %v1528_v42 = vmul.f32 %v2312_v53, %v1515_v27 }
 0x758   :  { %v1524_v4 = vmul.f32 %v2312_v53, %v1511_v52  ;;  %v1525_v50 = vmul.f32 %v2312_v53, %v1512_v41  ;;  %v1526_v31 = vmul.f32 %v2312_v53, %v1513_v39  ;;  %v1527_v62 = vmul.f32 %v2312_v53, %v1514_v30 }
 0x759   :  { %v1534_v13 = vadd.f32 %v2313_v5, %v1521_v21  ;;  %v1535_v7 = vadd.f32 %v2313_v5, %v1522_v36  ;;  %v1536_v23 = vadd.f32 %v2313_v5, %v1523_v49  ;;  %v1541_v38 = vadd.f32 %v2313_v5, %v1528_v42 }
 0x75a   :  { %v1537_v58 = vadd.f32 %v2313_v5, %v1524_v4  ;;  %v1538_v46 = vadd.f32 %v2313_v5, %v1525_v50  ;;  %v1539_v33 = vadd.f32 %v2313_v5, %v1526_v31  ;;  %v1540_v59 = vadd.f32 %v2313_v5, %v1527_v62 }
 0x75b   :  { %vm1543_vm14 = vcmp.ge.f32.partialorder %v1534_v13, 0.0  ;;  %vm1544_vm15 = vcmp.ge.f32.partialorder %v1535_v7, 0.0  ;;  %v1552_v16 = vmul.f32 %v1551_v48, %v1534_v13  ;;  %v1553_v6 = vmul.f32 %v1551_v48, %v1535_v7 }
 0x75c   :  { %vm1545_vm1 = vcmp.ge.f32.partialorder %v1536_v23, 0.0  ;;  %vm1546_vm2 = vcmp.ge.f32.partialorder %v1537_v58, 0.0  ;;  %v1554_v12 = vmul.f32 %v1551_v48, %v1536_v23  ;;  %v1555_v32 = vmul.f32 %v1551_v48, %v1537_v58 }
 0x75d   :  { %v1560_v15 = vsel %vm1543_vm14, %v1534_v13, %v1552_v16  ;;  %v1561_v1 = vsel %vm1544_vm15, %v1535_v7, %v1553_v6  ;;  %vm1547_vm3 = vcmp.ge.f32.partialorder %v1538_v46, 0.0  ;;  %vm1548_vm4 = vcmp.ge.f32.partialorder %v1539_v33, 0.0 }
 0x75e   :  { %v1568_v56 = vpack.c.bf16 %v1561_v1, %v1560_v15  ;;  %v1562_v17 = vsel %vm1545_vm1, %v1536_v23, %v1554_v12  ;;  %v1563_v19 = vsel %vm1546_vm2, %v1537_v58, %v1555_v32  ;;  %v1556_v3 = vmul.f32 %v1551_v48, %v1538_v46 }
 0x75f   :  { %v1569_v20 = vpack.c.bf16 %v1563_v19, %v1562_v17  ;;  %v1557_v0 = vmul.f32 %v1551_v48, %v1539_v33  ;;  %vm1549_vm5 = vcmp.ge.f32.partialorder %v1540_v59, 0.0  ;;  %vm1550_vm6 = vcmp.ge.f32.partialorder %v1541_v38, 0.0 }
 0x760   :  { %1650 = vmatmul.bf16.vlgmr.msra.gmra.mxu0 %v1568_v56  ;;  %v1564_v63 = vsel %vm1547_vm3, %v1538_v46, %v1556_v3  ;;  %v1558_v37 = vmul.f32 %v1551_v48, %v1540_v59  ;;  %v1559_v14 = vmul.f32 %v1551_v48, %v1541_v38 }
 0x761   :  { %v1565_v8 = vsel %vm1548_vm4, %v1539_v33, %v1557_v0 }
 0x762   :  { %v1570_v55 = vpack.c.bf16 %v1565_v8, %v1564_v63  ;;  %v1566_v11 = vsel %vm1549_vm5, %v1540_v59, %v1558_v37  ;;  %v1567_v24 = vsel %vm1550_vm6, %v1541_v38, %v1559_v14 }
 0x763   :  { %v1571_v25 = vpack.c.bf16 %v1567_v24, %v1566_v11 }
 0x770   :  { %1655 = vmatmul.bf16.gmra.mxu0 %v1569_v20 }
 0x780   :  { %1660 = vmatmul.bf16.gmra.mxu0 %v1570_v55  ;;  %v3309_v55 = vld [vmem:[%s3406_s8 + $0x2] ss:$0 sm:$0xff] }
 0x790   :  { %1665 = vmatmul.bf16.gmra.mxu0 %v1571_v25 }
 0x7dd   :  { %v1651_v18 = vpop.f32.mrf.mxu0 }
 0x7de   :  { %v3255_v26 = vadd.f32 %v2314_v22, %v1651_v18  ;;  %v3316_v18 = vld [vmem:[%s3407_s9 + $0x2] ss:$0 sm:$0xff] }
 0x7e0   :  { %1671 = vadd.xlane.f32.xlu2 %v3255_v26  ;;  %v1695_v9 = vmul.f32 %v3255_v26, %v3255_v26 }
 0x7e2   :  { %1703 = vadd.xlane.f32.xlu1 %v1695_v9 }
 0x7e5   :  { %v1653_v29 = vpop.f32.mrf.mxu0 }
 0x7e6   :  { %v3260_v51 = vadd.f32 %v2314_v22, %v1653_v29 }
 0x7e8   :  { %1673 = vadd.xlane.f32.xlu0 %v3260_v51  ;;  %v1696_v2 = vmul.f32 %v3260_v51, %v3260_v51 }
 0x7ea   :  { %1705 = vadd.xlane.f32.xlu2 %v1696_v2 }
 0x7ed   :  { %v1656_v47 = vpop.f32.mrf.mxu0 }
 0x7ee   :  { %v3265_v34 = vadd.f32 %v2314_v22, %v1656_v47 }
 0x7f0   :  { %1675 = vadd.xlane.f32.xlu1 %v3265_v34  ;;  %v1697_v45 = vmul.f32 %v3265_v34, %v3265_v34 }
 0x7f2   :  { %1707 = vadd.xlane.f32.xlu0 %v1697_v45  ;;  %v3319_v45 = vstv %s2236_s7 }
 0x7f5   :  { %v1658_v44 = vpop.f32.mrf.mxu0 }
 0x7f6   :  { %v3270_v57 = vadd.f32 %v2314_v22, %v1658_v44 }
 0x7f8   :  { %1677 = vadd.xlane.f32.xlu2 %v3270_v57  ;;  %v1698_v53 = vmul.f32 %v3270_v57, %v3270_v57 }
 0x7fa   :  { %1709 = vadd.xlane.f32.xlu1 %v1698_v53 }
 0x7fd   :  { %v1661_v48 = vpop.f32.mrf.mxu0 }
 0x7fe   :  { %v3275_v60 = vadd.f32 %v2314_v22, %v1661_v48 }
 0x800   :  { %1679 = vadd.xlane.f32.xlu0 %v3275_v60  ;;  %v1699_v10 = vmul.f32 %v3275_v60, %v3275_v60 }
 0x802   :  { %1711 = vadd.xlane.f32.xlu2 %v1699_v10 }
 0x805   :  { %v1663_v43 = vpop.f32.mrf.mxu0 }
 0x806   :  { %v3280_v28 = vadd.f32 %v2314_v22, %v1663_v43 }
 0x808   :  { %1681 = vadd.xlane.f32.xlu1 %v3280_v28  ;;  %v1700_v52 = vmul.f32 %v3280_v28, %v3280_v28 }
 0x80d   :  { %v1666_v35 = vpop.f32.mrf.mxu0 }
 0x80e   :  { %v3283_v27 = vadd.f32 %v2314_v22, %v1666_v35 }
 0x810   :  { %1683 = vadd.xlane.f32.xlu2 %v3283_v27  ;;  %v1701_v61 = vmul.f32 %v3283_v27, %v3283_v27 }
 0x812   :  { %1715 = vadd.xlane.f32.xlu1 %v1701_v61 }
 0x815   :  { %v1668_v54 = vpop.f32.mrf.mxu0 }
 0x816   :  { %v3288_v5 = vadd.f32 %v2314_v22, %v1668_v54 }
 0x818   :  { %1685 = vadd.xlane.f32.xlu0 %v3288_v5  ;;  %v1702_v40 = vmul.f32 %v3288_v5, %v3288_v5 }
 0x81a   :  { %1717 = vadd.xlane.f32.xlu2 %v1702_v40 }
 0x820   :  { %1713 = vadd.xlane.f32.xlu0 %v1700_v52 }
 0x853   :  { %v1672_v41 = vpop.xlane.xlu2 %1671 }
 0x854   :  { %v1687_v39 = vmul.f32 0.03125, %v1672_v41 }
 0x855   :  { %v1704_v30 = vpop.xlane.xlu1 %1703 }
 0x856   :  { %v1727_v21 = vmul.f32 %v1687_v39, %v1687_v39  ;;  %v1719_v36 = vmul.f32 0.03125, %v1704_v30  ;;  %v1751_v8 = vsub.f32 %v3255_v26, %v1687_v39 }
 0x858   :  { %v1735_v49 = vsub.f32 %v1719_v36, %v1727_v21 }
 0x85a   :  { %v1743_v42 = vmax.f32 %v1735_v49, 0.0 }
 0x85b   :  { %v1674_v4 = vpop.xlane.xlu0 %1673 }
 0x85c   :  { %v1759_v50 = vadd.f32 1e-05, %v1743_v42  ;;  %v3295_v31 = vmul.f32 0.03125, %v1674_v4 }
 0x85d   :  { %v1706_v62 = vpop.xlane.xlu2 %1705 }
 0x85e   :  { %2355 = vrsqrt.f32 %v1759_v50  ;;  %v1728_v13 = vmul.f32 %v3295_v31, %v3295_v31  ;;  %v1720_v7 = vmul.f32 0.03125, %v1706_v62  ;;  %vm1773_vm8 = vweird.f32 %v1759_v50 }
 0x85f   :  { %v1752_v30 = vsub.f32 %v3260_v51, %v3295_v31 }
 0x860   :  { %v1736_v23 = vsub.f32 %v1720_v7, %v1728_v13 }
 0x862   :  { %v1744_v38 = vmax.f32 %v1736_v23, 0.0 }
 0x863   :  { %v1676_v58 = vpop.xlane.xlu1 %1675 }
 0x864   :  { %v2356_v46 = vpop.eup %2355  ;;  %v3299_v33 = vmul.f32 0.03125, %v1676_v58  ;;  %v1760_v16 = vadd.f32 1e-05, %v1744_v38 }
 0x865   :  { %v1768_v59 = vmul.f32 %v2356_v46, %v1759_v50  ;;  %v1708_v6 = vpop.xlane.xlu0 %1707  ;;  %vm1774_vm7 = vweird.f32 %v2356_v46 }
 0x866   :  { %v1729_v12 = vmul.f32 %v3299_v33, %v3299_v33  ;;  %v1721_v32 = vmul.f32 0.03125, %v1708_v6  ;;  %2357 = vrsqrt.f32 %v1760_v16  ;;  %vm1775_vm9 = vmor %vm1773_vm8, %vm1774_vm7  ;;  %vm1783_vm11 = vweird.f32 %v1760_v16 }
 0x867   :  { %v1769_v15 = vmul.f32 %v2356_v46, %v1768_v59 }
 0x868   :  { %v1737_v1 = vsub.f32 %v1721_v32, %v1729_v12 }
 0x869   :  { %v1770_v56 = vmul.f32 0.5, %v1769_v15 }
 0x86a   :  { %v1745_v17 = vmax.f32 %v1737_v1, 0.0 }
 0x86b   :  { %v1771_v19 = vsub.f32 1.5, %v1770_v56  ;;  %v1678_v3 = vpop.xlane.xlu2 %1677 }
 0x86c   :  { %v1761_v20 = vadd.f32 1e-05, %v1745_v17  ;;  %v3303_v0 = vmul.f32 0.03125, %v1678_v3  ;;  %v2358_v63 = vpop.eup %2357 }
 0x86d   :  { %v1772_v37 = vmul.f32 %v2356_v46, %v1771_v19  ;;  %v1710_v14 = vpop.xlane.xlu1 %1709  ;;  %v1778_v11 = vmul.f32 %v2358_v63, %v1760_v16  ;;  %vm1784_vm10 = vweird.f32 %v2358_v63 }
 0x86e   :  { %2359 = vrsqrt.f32 %v1761_v20  ;;  %v1730_v25 = vmul.f32 %v3303_v0, %v3303_v0  ;;  %v1722_v22 = vmul.f32 0.03125, %v1710_v14  ;;  %vm1785_vm12 = vmor %vm1783_vm11, %vm1784_vm10  ;;  %vm1793_vm14 = vweird.f32 %v1761_v20 }
 0x86f   :  { %v1776_v24 = vsel %vm1775_vm9, %v2356_v46, %v1772_v37  ;;  %v1779_v26 = vmul.f32 %v2358_v63, %v1778_v11  ;;  %v1753_v46 = vsub.f32 %v3265_v34, %v3299_v33  ;;  %v1754_v11 = vsub.f32 %v3270_v57, %v3303_v0 }
 0x870   :  { %v1847_v9 = vmul.f32 %v1776_v24, %v1751_v8  ;;  %v1738_v29 = vsub.f32 %v1722_v22, %v1730_v25 }
 0x871   :  { %v1780_v47 = vmul.f32 0.5, %v1779_v26 }
 0x872   :  { %v1860_v2 = vmul.f32 %v3309_v55, %v1847_v9  ;;  %v1746_v44 = vmax.f32 %v1738_v29, 0.0 }
 0x873   :  { %v1680_v53 = vpop.xlane.xlu0 %1679  ;;  %v1781_v43 = vsub.f32 1.5, %v1780_v47 }
 0x874   :  { %v2360_v48 = vpop.eup %2359  ;;  %v1873_v10 = vadd.f32 %v3316_v18, %v1860_v2  ;;  %v3322_v35 = vmul.f32 0.03125, %v1680_v53  ;;  %v1762_v54 = vadd.f32 1e-05, %v1746_v44 }
 0x875   :  { %v1788_v61 = vmul.f32 %v2360_v48, %v1761_v20  ;;  %v1712_v40 = vpop.xlane.xlu2 %1711  ;;  %v1782_v41 = vmul.f32 %v2358_v63, %v1781_v43  ;;  %vm1794_vm13 = vweird.f32 %v2360_v48 }
 0x876   :  { %vm1882_vm0 = vcmp.ge.f32.partialorder %v1873_v10, 0.0  ;;  %v1891_v52 = vmul.f32 %v3319_v45, %v1873_v10  ;;  %v1731_v39 = vmul.f32 %v3322_v35, %v3322_v35  ;;  %2361 = vrsqrt.f32 %v1762_v54  ;;  %vm1795_vm15 = vmor %vm1793_vm14, %vm1794_vm13 }
 0x877   :  { %v1789_v21 = vmul.f32 %v2360_v48, %v1788_v61  ;;  %v1786_v49 = vsel %vm1785_vm12, %v2358_v63, %v1782_v41  ;;  %v1723_v42 = vmul.f32 0.03125, %v1712_v40  ;;  %vm1803_vm3 = vweird.f32 %v1762_v54 }
 0x878   :  { %v1899_v36 = vsel %vm1882_vm0, %v1873_v10, %v1891_v52  ;;  %v1848_v4 = vmul.f32 %v1786_v49, %v1752_v30 }
 0x879   :  { %1907 = vst [vmem:[%s3410_s12] sm:$0xff] %v1899_v36  ;;  %v1790_v50 = vmul.f32 0.5, %v1789_v21  ;;  %v1739_v62 = vsub.f32 %v1723_v42, %v1731_v39  ;;  %v1755_v39 = vsub.f32 %v3275_v60, %v3322_v35 }
 0x87a   :  { %v1861_v13 = vmul.f32 %v3309_v55, %v1848_v4 }
 0x87b   :  { %v1791_v7 = vsub.f32 1.5, %v1790_v50  ;;  %v1747_v23 = vmax.f32 %v1739_v62, 0.0  ;;  %v1682_v58 = vpop.xlane.xlu1 %1681 }
 0x87c   :  { %v2362_v38 = vpop.eup %2361  ;;  %v1874_v51 = vadd.f32 %v3316_v18, %v1861_v13  ;;  %v3361_v49 = vmul.f32 0.03125, %v1682_v58 }
 0x87d   :  { %v1792_v31 = vmul.f32 %v2360_v48, %v1791_v7  ;;  %v1798_v59 = vmul.f32 %v2362_v38, %v1762_v54  ;;  %v1763_v16 = vadd.f32 1e-05, %v1747_v23  ;;  %vm1804_vm2 = vweird.f32 %v2362_v38 }
 0x87e   :  { %vm1883_vm1 = vcmp.ge.f32.partialorder %v1874_v51, 0.0  ;;  %v1892_v6 = vmul.f32 %v3319_v45, %v1874_v51  ;;  %vm1805_vm5 = vmor %vm1803_vm3, %vm1804_vm2  ;;  %v1732_v60 = vmul.f32 %v3361_v49, %v3361_v49 }
 0x87f   :  { %v1796_v12 = vsel %vm1795_vm15, %v2360_v48, %v1792_v31  ;;  %v1799_v15 = vmul.f32 %v2362_v38, %v1798_v59  ;;  %2363 = vrsqrt.f32 %v1763_v16  ;;  %vm1813_vm7 = vweird.f32 %v1763_v16 }
 0x880   :  { %v1849_v32 = vmul.f32 %v1796_v12, %v1753_v46  ;;  %v1900_v1 = vsel %vm1883_vm1, %v1874_v51, %v1892_v6 }
 0x881   :  { %1908 = vst [vmem:[%s3410_s12 + $0x8] sm:$0xff] %v1900_v1  ;;  %v1800_v17 = vmul.f32 0.5, %v1799_v15 }
 0x882   :  { %v1862_v56 = vmul.f32 %v3309_v55, %v1849_v32 }
 0x883   :  { %v1684_v19 = vpop.xlane.xlu2 %1683  ;;  %v1801_v33 = vsub.f32 1.5, %v1800_v17 }
 0x884   :  { %v1875_v34 = vadd.f32 %v3316_v18, %v1862_v56  ;;  %v3342_v3 = vmul.f32 0.03125, %v1684_v19 }
 0x885   :  { %v1716_v20 = vpop.xlane.xlu1 %1715  ;;  %v2364_v63 = vpop.eup %2363  ;;  %v1802_v14 = vmul.f32 %v2362_v38, %v1801_v33 }
 0x886   :  { %vm1884_vm4 = vcmp.ge.f32.partialorder %v1875_v34, 0.0  ;;  %v1893_v37 = vmul.f32 %v3319_v45, %v1875_v34  ;;  %v1733_v8 = vmul.f32 %v3342_v3, %v3342_v3  ;;  %v1808_v24 = vmul.f32 %v2364_v63, %v1763_v16 }
 0x887   :  { %v1725_v25 = vmul.f32 0.03125, %v1716_v20  ;;  %v1806_v9 = vsel %vm1805_vm5, %v2362_v38, %v1802_v14  ;;  %vm1814_vm6 = vweird.f32 %v2364_v63  ;;  %v1757_v56 = vsub.f32 %v3283_v27, %v3342_v3 }
 0x888   :  { %v1901_v22 = vsel %vm1884_vm4, %v1875_v34, %v1893_v37  ;;  %v1850_v26 = vmul.f32 %v1806_v9, %v1754_v11  ;;  %v1809_v29 = vmul.f32 %v2364_v63, %v1808_v24  ;;  %vm1815_vm9 = vmor %vm1813_vm7, %vm1814_vm6 }
 0x889   :  { %1909 = vst [vmem:[%s3410_s12 + $0x10] sm:$0xff] %v1901_v22  ;;  %v1741_v2 = vsub.f32 %v1725_v25, %v1733_v8 }
 0x88a   :  { %v1863_v47 = vmul.f32 %v3309_v55, %v1850_v26  ;;  %v1810_v44 = vmul.f32 0.5, %v1809_v29 }
 0x88b   :  { %v1749_v53 = vmax.f32 %v1741_v2, 0.0  ;;  %v1686_v48 = vpop.xlane.xlu0 %1685 }
 0x88c   :  { %v3353_v10 = vmul.f32 0.03125, %v1686_v48  ;;  %v1876_v57 = vadd.f32 %v3316_v18, %v1863_v47  ;;  %v1811_v0 = vsub.f32 1.5, %v1810_v44  ;;  %v1756_v44 = vsub.f32 %v3280_v28, %v3361_v49 }
 0x88d   :  { %v1765_v43 = vadd.f32 1e-05, %v1749_v53  ;;  %v1718_v61 = vpop.xlane.xlu2 %1717 }
 0x88e   :  { %v1734_v54 = vmul.f32 %v3353_v10, %v3353_v10  ;;  %v1726_v40 = vmul.f32 0.03125, %v1718_v61  ;;  %vm1885_vm8 = vcmp.ge.f32.partialorder %v1876_v57, 0.0  ;;  %v1894_v52 = vmul.f32 %v3319_v45, %v1876_v57 }
 0x88f   :  { %v1812_v41 = vmul.f32 %v2364_v63, %v1811_v0  ;;  %2365 = vrsqrt.f32 %v1765_v43  ;;  %vm1833_vm0 = vweird.f32 %v1765_v43  ;;  %v1758_v24 = vsub.f32 %v3288_v5, %v3353_v10 }
 0x890   :  { %v1742_v30 = vsub.f32 %v1726_v40, %v1734_v54  ;;  %v1902_v21 = vsel %vm1885_vm8, %v1876_v57, %v1894_v52 }
 0x891   :  { %v1816_v36 = vsel %vm1815_vm9, %v2364_v63, %v1812_v41  ;;  %1910 = vst [vmem:[%s3410_s12 + $0x18] sm:$0xff] %v1902_v21 }
 0x892   :  { %v1851_v42 = vmul.f32 %v1816_v36, %v1755_v39  ;;  %v1750_v4 = vmax.f32 %v1742_v30, 0.0 }
 0x893   :  { %v1714_v50 = vpop.xlane.xlu0 %1713 }
 0x894   :  { %v1864_v62 = vmul.f32 %v3309_v55, %v1851_v42  ;;  %v1766_v13 = vadd.f32 1e-05, %v1750_v4  ;;  %v1724_v7 = vmul.f32 0.03125, %v1714_v50 }
 0x895   :  { %v2366_v23 = vpop.eup %2365 }
 0x896   :  { %v1877_v35 = vadd.f32 %v3316_v18, %v1864_v62  ;;  %v1828_v38 = vmul.f32 %v2366_v23, %v1765_v43  ;;  %2367 = vrsqrt.f32 %v1766_v13  ;;  %v1740_v51 = vsub.f32 %v1724_v7, %v1732_v60 }
 0x897   :  { %vm1834_vm11 = vweird.f32 %v2366_v23  ;;  %vm1843_vm14 = vweird.f32 %v1766_v13 }
 0x898   :  { %vm1886_vm10 = vcmp.ge.f32.partialorder %v1877_v35, 0.0  ;;  %v1895_v31 = vmul.f32 %v3319_v45, %v1877_v35  ;;  %v1829_v58 = vmul.f32 %v2366_v23, %v1828_v38  ;;  %v1748_v46 = vmax.f32 %v1740_v51, 0.0  ;;  %vm1835_vm12 = vmor %vm1833_vm0, %vm1834_vm11 }
 0x89a   :  { %v1903_v59 = vsel %vm1886_vm10, %v1877_v35, %v1895_v31  ;;  %v1830_v16 = vmul.f32 0.5, %v1829_v58  ;;  %v1764_v6 = vadd.f32 1e-05, %v1748_v46 }
 0x89b   :  { %1911 = vst [vmem:[%s3410_s12 + $0x20] sm:$0xff] %v1903_v59 }
 0x89c   :  { %v2368_v12 = vpop.eup %2367  ;;  %v1831_v32 = vsub.f32 1.5, %v1830_v16  ;;  %2369 = vrsqrt.f32 %v1764_v6  ;;  %vm1823_vm3 = vweird.f32 %v1764_v6 }
 0x89d   :  { %v1838_v15 = vmul.f32 %v2368_v12, %v1766_v13  ;;  %vm1844_vm13 = vweird.f32 %v2368_v12 }
 0x89e   :  { %v1832_v1 = vmul.f32 %v2366_v23, %v1831_v32  ;;  %vm1845_vm15 = vmor %vm1843_vm14, %vm1844_vm13 }
 0x89f   :  { %v1839_v17 = vmul.f32 %v2368_v12, %v1838_v15 }
 0x8a0   :  { %v1836_v19 = vsel %vm1835_vm12, %v2366_v23, %v1832_v1 }
 0x8a1   :  { %v1853_v34 = vmul.f32 %v1836_v19, %v1757_v56  ;;  %v1840_v33 = vmul.f32 0.5, %v1839_v17 }
 0x8a2   :  { %v2370_v20 = vpop.eup %2369 }
 0x8a3   :  { %v1866_v63 = vmul.f32 %v3309_v55, %v1853_v34  ;;  %v1841_v37 = vsub.f32 1.5, %v1840_v33  ;;  %v1818_v14 = vmul.f32 %v2370_v20, %v1764_v6  ;;  %vm1824_vm2 = vweird.f32 %v2370_v20 }
 0x8a4   :  { %vm1825_vm4 = vmor %vm1823_vm3, %vm1824_vm2 }
 0x8a5   :  { %v1879_v8 = vadd.f32 %v3316_v18, %v1866_v63  ;;  %v1842_v11 = vmul.f32 %v2368_v12, %v1841_v37  ;;  %v1819_v27 = vmul.f32 %v2370_v20, %v1818_v14 }
 0x8a7   :  { %vm1888_vm1 = vcmp.ge.f32.partialorder %v1879_v8, 0.0  ;;  %v1897_v3 = vmul.f32 %v3319_v45, %v1879_v8  ;;  %v1846_v25 = vsel %vm1845_vm15, %v2368_v12, %v1842_v11  ;;  %v1820_v9 = vmul.f32 0.5, %v1819_v27 }
 0x8a8   :  { %v1854_v22 = vmul.f32 %v1846_v25, %v1758_v24 }
 0x8a9   :  { %v1905_v26 = vsel %vm1888_vm1, %v1879_v8, %v1897_v3  ;;  %v1821_v2 = vsub.f32 1.5, %v1820_v9 }
 0x8aa   :  { %1913 = vst [vmem:[%s3410_s12 + $0x30] sm:$0xff] %v1905_v26  ;;  %v1867_v29 = vmul.f32 %v3309_v55, %v1854_v22 }
 0x8ab   :  { %v1822_v5 = vmul.f32 %v2370_v20, %v1821_v2 }
 0x8ac   :  { %v1880_v47 = vadd.f32 %v3316_v18, %v1867_v29 }
 0x8ad   :  { %v1826_v48 = vsel %vm1825_vm4, %v2370_v20, %v1822_v5 }
 0x8ae   :  { %vm1889_vm5 = vcmp.ge.f32.partialorder %v1880_v47, 0.0  ;;  %v1898_v53 = vmul.f32 %v3319_v45, %v1880_v47  ;;  %v1852_v10 = vmul.f32 %v1826_v48, %v1756_v44 }
 0x8b0   :  { %v1906_v57 = vsel %vm1889_vm5, %v1880_v47, %v1898_v53  ;;  %v1865_v0 = vmul.f32 %v3309_v55, %v1852_v10 }
 0x8b1   :  { %1914 = vst [vmem:[%s3410_s12 + $0x38] sm:$0xff] %v1906_v57 }
 0x8b2   :  { %v1878_v43 = vadd.f32 %v3316_v18, %v1865_v0 }
 0x8b4   :  { %vm1887_vm6 = vcmp.ge.f32.partialorder %v1878_v43, 0.0  ;;  %v1896_v61 = vmul.f32 %v3319_v45, %v1878_v43 }
 0x8b6   :  { %v1904_v54 = vsel %vm1887_vm6, %v1878_v43, %v1896_v61 }
 0x8b7   :  { %1912 = vst [vmem:[%s3410_s12 + $0x28] sm:$0xff] %v1904_v54 }
 0x8b8   :  { %1919 = vsyncpa [#allocation3], 1 }
 0x8b9   :  { %1920 = vsyncpa [#allocation5], 1 }

</bundles_post_ra>
